<compile_context>
chip_gen: v5e
topology: v5e:2x2
jax: 0.10.0
libtpu: 0.0.40
codegen_flags: <defaults>
</compile_context>

<pallas_src>
import jax
import jax.numpy as jnp
from jax.experimental import pallas as pl
from jax.experimental.pallas import tpu as pltpu


def _round_up(x, m):
    return ((x + m - 1) // m) * m


def _num_tensorcores_per_device():
    """Best-effort count of TensorCores a single Pallas 'parallel' grid can use."""
    try:
        info = pltpu.get_tpu_info()
        for attr in ("num_cores", "cores_per_chip", "num_tensorcores", "tensorcore_count"):
            n = getattr(info, attr, None)
            if n:
                return int(n)
    except Exception:
        pass
    try:
        kind = jax.devices()[0].device_kind.lower()
    except Exception:
        return 1
    # Megacore-style devices (2 TensorCores behind one device).
    if ("v4" in kind) or ("v5p" in kind) or ("v7" in kind) or ("tpu7" in kind):
        return 2
    return 1


def critic_kernel(state_t_ref, action_t_ref, w1_ref, b1_ref, w2_ref, b2_ref,
                  w3_ref, b3_ref, o_ref):
    # Fused concat along the sublane (feature) axis.  state_dim rows sit at a
    # f32-tile-aligned offset, so this is a cheap vreg-stacking concat, and it lets
    # layer 1 be a single MXU matmul instead of two tiny-K matmuls.
    x_t = jnp.concatenate([state_t_ref[...], action_t_ref[...]], axis=0)   # (in_dim, tb) f32
    x_t = x_t.astype(jnp.bfloat16)

    # Layer 1: (H, in_dim) @ (in_dim, tile_b) on the MXU, bf16 operands, f32 accumulate.
    h1 = jnp.dot(w1_ref[...], x_t, preferred_element_type=jnp.float32) + b1_ref[...]
    h1 = jnp.maximum(h1, 0.0)

    # Layer 2: (H, H) @ (H, tile_b), bf16 operands, f32 accumulate.
    h2 = jnp.dot(w2_ref[...], h1.astype(jnp.bfloat16),
                 preferred_element_type=jnp.float32) + b2_ref[...]
    h2 = jnp.maximum(h2, 0.0)

    # Layer 3: Linear(H, 1) as VPU multiply + sublane (XLU) reduction.  In the
    # feature-major layout the result is already a lane-dense (1, tile_b) row, so the
    # store below is a full unmasked vector store.
    q = jnp.sum(h2 * w3_ref[...], axis=0, keepdims=True) + b3_ref[0, 0]    # (1, tile_b)
    o_ref[...] = q.astype(o_ref.dtype)


def critic_forward(state, action, params, *, tile_b=None, num_tensorcores=None):
    """state: [B, state_dim] f32, action: [B, action_dim] f32 -> q: [B, 1] f32."""
    w1, b1, w2, b2, w3, b3 = params
    B, state_dim = state.shape
    action_dim = action.shape[1]
    H, in_dim = w1.shape
    assert in_dim == state_dim + action_dim

    if num_tensorcores is None:
        num_tensorcores = _num_tensorcores_per_device()

    # Generation-aware tile selection (batch lives on the lane axis).
    if tile_b is None:
        if num_tensorcores > 1 and B > 128:
            # Exactly one lane-aligned tile per TensorCore (v4/v5p/v7x megacore).
            tile_b = _round_up(pl.cdiv(B, num_tensorcores), 128)
        else:
            # Single TC (v5e/v6e): grid=1 kills per-step overhead; cap huge batches.
            tile_b = B if B <= 2048 else 1024
    if tile_b >= B:
        tile_b = B                       # full-extent block is always legal
    elif tile_b % 128 != 0:
        tile_b = min(_round_up(tile_b, 128), B)
    grid = (pl.cdiv(B, tile_b),)

    # Feature-major (transposed) activations: pure layout plumbing done by XLA.
    state_t = state.T                    # (state_dim, B)
    action_t = action.T                  # (action_dim, B)

    in_specs = [
        # batch-tiled activations (auto double-buffered across the grid)
        pl.BlockSpec((state_dim, tile_b), lambda i: (0, i)),
        pl.BlockSpec((action_dim, tile_b), lambda i: (0, i)),
        # weights / biases: whole-array blocks, resident across grid iterations
        pl.BlockSpec((H, in_dim), lambda i: (0, 0)),   # w1 (bf16)
        pl.BlockSpec((H, 1), lambda i: (0, 0)),        # b1
        pl.BlockSpec((H, H), lambda i: (0, 0)),        # w2 (bf16)
        pl.BlockSpec((H, 1), lambda i: (0, 0)),        # b2
        pl.BlockSpec((H, 1), lambda i: (0, 0)),        # w3 column
        # scalar final bias in SMEM (cheap scalar path, no padded VMEM tile)
        pl.BlockSpec(memory_space=pltpu.MemorySpace.SMEM),
    ]
    # Lane-dense output row; reshaped to [B, 1] by the wrapper.
    out_specs = pl.BlockSpec((1, tile_b), lambda i: (0, i))

    flops = 2 * B * (in_dim * H + H * H + H)
    bytes_accessed = (
        state.size * 4 + action.size * 4 + B * 4          # activations in / q out (f32)
        + w1.size * 2 + w2.size * 2                        # bf16 weights
        + (b1.size + b2.size + w3.size + b3.size) * 4)     # f32 small params
    cost = pl.CostEstimate(flops=flops, transcendentals=0,
                           bytes_accessed=bytes_accessed)

    out = pl.pallas_call(
        critic_kernel,
        out_shape=jax.ShapeDtypeStruct((1, B), jnp.float32),
        grid=grid,
        in_specs=in_specs,
        out_specs=out_specs,
        compiler_params=pltpu.CompilerParams(
            dimension_semantics=("parallel",)),   # shards tiles across TCs on megacore chips
        cost_estimate=cost,
    )(state_t, action_t, w1, b1, w2, b2, w3, b3)

    return out.reshape(B, 1)


def init_params(key, state_dim, action_dim, hidden_dim):
    """Deterministic synthetic init matching the Critic's nn.Linear layers.

    W1/W2 are kept in torch `weight` orientation ([out, in]) because the kernel runs
    feature-major (h = W @ x_t); the MXU operands (W1, W2) are stored in bf16.
    """
    in_dim = state_dim + action_dim
    k1, k2, k3, k4, k5, k6 = jax.random.split(key, 6)
    w1 = (jax.random.normal(k1, (hidden_dim, in_dim), jnp.float32) * 0.1).astype(jnp.bfloat16)
    b1 = jax.random.normal(k2, (hidden_dim, 1), jnp.float32) * 0.1
    w2 = (jax.random.normal(k3, (hidden_dim, hidden_dim), jnp.float32) * 0.1).astype(jnp.bfloat16)
    b2 = jax.random.normal(k4, (hidden_dim, 1), jnp.float32) * 0.1
    w3 = jax.random.normal(k5, (hidden_dim, 1), jnp.float32) * 0.1   # torch (1, H) stored as column
    b3 = jax.random.normal(k6, (1, 1), jnp.float32) * 0.1
    return (w1, b1, w2, b2, w3, b3)


def reference_forward(state, action, params):
    """Pure-JAX reference mirroring the PyTorch forward (concat -> MLP) and the
    kernel's numerics (bf16 matmul operands, f32 accumulation)."""
    w1, b1, w2, b2, w3, b3 = params
    x = jnp.concatenate([state, action], axis=1).astype(jnp.bfloat16)           # [B, in_dim]
    h1 = jnp.dot(x, w1.T, preferred_element_type=jnp.float32) + b1[:, 0]        # [B, H]
    h1 = jnp.maximum(h1, 0.0)
    h2 = jnp.dot(h1.astype(jnp.bfloat16), w2.T,
                 preferred_element_type=jnp.float32) + b2[:, 0]                  # [B, H]
    h2 = jnp.maximum(h2, 0.0)
    return h2 @ w3 + b3[0, 0]                                                    # [B, 1]


if __name__ == "__main__":
    # hidden_dim=256 is the module default (lane-dense); batch sized so that both the
    # single-TC (grid=1) and dual-TC (two 128-row tiles) paths are exact fits.
    batch, state_dim, action_dim, hidden_dim = 256, 8, 4, 256

    key = jax.random.PRNGKey(0)
    k_s, k_a, k_p = jax.random.split(key, 3)

    state = jax.random.normal(k_s, (batch, state_dim), jnp.float32)
    action = jax.random.normal(k_a, (batch, action_dim), jnp.float32)
    params = init_params(k_p, state_dim, action_dim, hidden_dim)

    q = critic_forward(state, action, params)
    q = jax.block_until_ready(q)

    q_ref = reference_forward(state, action, params)
    assert q.shape == (batch, 1), q.shape
    # bf16 MXU operands -> looser tolerance than a pure-f32 check.
    assert jnp.allclose(q, q_ref, atol=5e-3, rtol=5e-3), "mismatch vs reference"

    print("KERNEL_OK")
</pallas_src>

<mosaic_0001>
module attributes {stable_mosaic.version = 11 : i64} {
  func.func @critic_kernel(%arg0: i32, %arg1: memref<8x256xf32, #tpu.memory_space<vmem>>, %arg2: memref<4x256xf32, #tpu.memory_space<vmem>>, %arg3: memref<256x12xbf16, #tpu.memory_space<vmem>>, %arg4: memref<256x1xf32, #tpu.memory_space<vmem>>, %arg5: memref<256x256xbf16, #tpu.memory_space<vmem>>, %arg6: memref<256x1xf32, #tpu.memory_space<vmem>>, %arg7: memref<256x1xf32, #tpu.memory_space<vmem>>, %arg8: memref<1x1xf32, #tpu.memory_space<smem>>, %arg9: memref<1x256xf32, #tpu.memory_space<vmem>>) attributes {dimension_semantics = [#tpu.dimension_semantics<parallel>], iteration_bounds = array<i64: 1>, scalar_prefetch = 0 : i64, scratch_operands = 0 : i64, tpu.core_type = #tpu.core_type<tc>, window_params = [{transform_indices = @transform_0, window_bounds = array<i64: 8, 256>}, {transform_indices = @transform_1, window_bounds = array<i64: 4, 256>}, {pipeline_mode = #tpu.pipeline_mode<synchronous>, transform_indices = @transform_2, window_bounds = array<i64: 256, 12>}, {pipeline_mode = #tpu.pipeline_mode<synchronous>, transform_indices = @transform_3, window_bounds = array<i64: 256, 1>}, {pipeline_mode = #tpu.pipeline_mode<synchronous>, transform_indices = @transform_4, window_bounds = array<i64: 256, 256>}, {pipeline_mode = #tpu.pipeline_mode<synchronous>, transform_indices = @transform_5, window_bounds = array<i64: 256, 1>}, {pipeline_mode = #tpu.pipeline_mode<synchronous>, transform_indices = @transform_6, window_bounds = array<i64: 256, 1>}, {transform_indices = @transform_7, window_bounds = array<i64: 1, 1>}, {transform_indices = @transform_8, window_bounds = array<i64: 1, 256>}]} {
    %c0 = arith.constant 0 : index
    %c0_0 = arith.constant 0 : index
    %0 = vector.load %arg1[%c0, %c0_0] : memref<8x256xf32, #tpu.memory_space<vmem>>, vector<8x256xf32>
    %c0_1 = arith.constant 0 : index
    %c0_2 = arith.constant 0 : index
    %1 = vector.load %arg2[%c0_1, %c0_2] : memref<4x256xf32, #tpu.memory_space<vmem>>, vector<4x256xf32>
    %2 = tpu.concatenate %0, %1 in 0 : vector<8x256xf32>, vector<4x256xf32> -> vector<12x256xf32>
    %3 = arith.truncf %2 : vector<12x256xf32> to vector<12x256xbf16>
    %c0_3 = arith.constant 0 : index
    %c0_4 = arith.constant 0 : index
    %4 = vector.load %arg3[%c0_3, %c0_4] : memref<256x12xbf16, #tpu.memory_space<vmem>>, vector<256x12xbf16>
    %cst = arith.constant dense<0.000000e+00> : vector<256x256xf32>
    %5 = tpu.matmul %4, %3, %cst {dimension_numbers = #tpu.dot_dimension_numbers<[1], [0], [0], [1], [0, 0, 1, 1], [], []>} : vector<256x12xbf16>, vector<12x256xbf16>, vector<256x256xf32> -> vector<256x256xf32>
    %c0_5 = arith.constant 0 : index
    %c0_6 = arith.constant 0 : index
    %6 = vector.load %arg4[%c0_5, %c0_6] : memref<256x1xf32, #tpu.memory_space<vmem>>, vector<256x1xf32>
    %7 = vector.broadcast %6 : vector<256x1xf32> to vector<256x256xf32>
    %8 = arith.addf %5, %7 : vector<256x256xf32>
    %cst_7 = arith.constant 0.000000e+00 : f32
    %9 = vector.broadcast %cst_7 : f32 to vector<256x256xf32>
    %10 = arith.maximumf %8, %9 : vector<256x256xf32>
    %c0_8 = arith.constant 0 : index
    %c0_9 = arith.constant 0 : index
    %11 = vector.load %arg5[%c0_8, %c0_9] : memref<256x256xbf16, #tpu.memory_space<vmem>>, vector<256x256xbf16>
    %12 = arith.truncf %10 : vector<256x256xf32> to vector<256x256xbf16>
    %cst_10 = arith.constant dense<0.000000e+00> : vector<256x256xf32>
    %13 = tpu.matmul %11, %12, %cst_10 {dimension_numbers = #tpu.dot_dimension_numbers<[1], [0], [0], [1], [0, 0, 1, 1], [], []>} : vector<256x256xbf16>, vector<256x256xbf16>, vector<256x256xf32> -> vector<256x256xf32>
    %c0_11 = arith.constant 0 : index
    %c0_12 = arith.constant 0 : index
    %14 = vector.load %arg6[%c0_11, %c0_12] : memref<256x1xf32, #tpu.memory_space<vmem>>, vector<256x1xf32>
    %15 = vector.broadcast %14 : vector<256x1xf32> to vector<256x256xf32>
    %16 = arith.addf %13, %15 : vector<256x256xf32>
    %cst_13 = arith.constant 0.000000e+00 : f32
    %17 = vector.broadcast %cst_13 : f32 to vector<256x256xf32>
    %18 = arith.maximumf %16, %17 : vector<256x256xf32>
    %c0_14 = arith.constant 0 : index
    %c0_15 = arith.constant 0 : index
    %19 = vector.load %arg7[%c0_14, %c0_15] : memref<256x1xf32, #tpu.memory_space<vmem>>, vector<256x1xf32>
    %20 = vector.broadcast %19 : vector<256x1xf32> to vector<256x256xf32>
    %21 = arith.mulf %18, %20 : vector<256x256xf32>
    %cst_16 = arith.constant dense<0.000000e+00> : vector<256xf32>
    %22 = vector.multi_reduction <add>, %21, %cst_16 [0] : vector<256x256xf32> to vector<256xf32>
    %23 = vector.shape_cast %22 : vector<256xf32> to vector<1x256xf32>
    %c0_17 = arith.constant 0 : index
    %c0_18 = arith.constant 0 : index
    %24 = memref.load %arg8[%c0_17, %c0_18] : memref<1x1xf32, #tpu.memory_space<smem>>
    %25 = vector.broadcast %24 : f32 to vector<1x256xf32>
    %26 = arith.addf %23, %25 : vector<1x256xf32>
    %c0_19 = arith.constant 0 : index
    %c0_20 = arith.constant 0 : index
    %27 = vector.load %arg9[%c0_19, %c0_20] : memref<1x256xf32, #tpu.memory_space<vmem>>, vector<1x256xf32>
    tpu.vector_store %arg9[%c0_19, %c0_20], %26 {strides = array<i32>} : memref<1x256xf32, #tpu.memory_space<vmem>>, vector<1x256xf32>,
    return
  }
  func.func @transform_0(%arg0: i32) -> (i32, i32) {
    %c0_i32 = arith.constant 0 : i32
    %c0_i32_0 = arith.constant 0 : i32
    return %c0_i32, %arg0 : i32, i32
  }
  func.func @transform_1(%arg0: i32) -> (i32, i32) {
    %c0_i32 = arith.constant 0 : i32
    %c0_i32_0 = arith.constant 0 : i32
    return %c0_i32, %arg0 : i32, i32
  }
  func.func @transform_2(%arg0: i32) -> (i32, i32) {
    %c0_i32 = arith.constant 0 : i32
    %c0_i32_0 = arith.constant 0 : i32
    %c0_i32_1 = arith.constant 0 : i32
    return %c0_i32, %c0_i32_0 : i32, i32
  }
  func.func @transform_3(%arg0: i32) -> (i32, i32) {
    %c0_i32 = arith.constant 0 : i32
    %c0_i32_0 = arith.constant 0 : i32
    %c0_i32_1 = arith.constant 0 : i32
    return %c0_i32, %c0_i32_0 : i32, i32
  }
  func.func @transform_4(%arg0: i32) -> (i32, i32) {
    %c0_i32 = arith.constant 0 : i32
    %c0_i32_0 = arith.constant 0 : i32
    %c0_i32_1 = arith.constant 0 : i32
    return %c0_i32, %c0_i32_0 : i32, i32
  }
  func.func @transform_5(%arg0: i32) -> (i32, i32) {
    %c0_i32 = arith.constant 0 : i32
    %c0_i32_0 = arith.constant 0 : i32
    %c0_i32_1 = arith.constant 0 : i32
    return %c0_i32, %c0_i32_0 : i32, i32
  }
  func.func @transform_6(%arg0: i32) -> (i32, i32) {
    %c0_i32 = arith.constant 0 : i32
    %c0_i32_0 = arith.constant 0 : i32
    %c0_i32_1 = arith.constant 0 : i32
    return %c0_i32, %c0_i32_0 : i32, i32
  }
  func.func @transform_7(%arg0: i32) -> (i32, i32) {
    %c0_i32 = arith.constant 0 : i32
    %c0_i32_0 = arith.constant 0 : i32
    %c0_i32_1 = arith.constant 0 : i32
    return %c0_i32, %c0_i32_0 : i32, i32
  }
  func.func @transform_8(%arg0: i32) -> (i32, i32) {
    %c0_i32 = arith.constant 0 : i32
    %c0_i32_0 = arith.constant 0 : i32
    return %c0_i32, %arg0 : i32, i32
  }
}

</mosaic_0001>

<bundles_post_ra>
// kernel: tpu_custom_call.1
= control target key start
LH: loop header
LB: loop body
LE: loop exit
PB: predicated region body
PF: predicated region fallthrough
CT: control target
= control target key end

     0   :  { %v2155_v3 = vmov 0   ;;  %s3234_s0 = inlined_call_operand.vmem [shape: f32[8,256], index: 0, kind: input, shape index: {}]   ;;  %s3235_s1 = inlined_call_operand.vmem [shape: f32[4,256], index: 1, kind: input, shape index: {}]   ;;  %s3236_s2 = inlined_call_operand.vmem [shape: bf16[256,12], index: 2, kind: input, shape index: {}]   ;;  %s3237_s3 = inlined_call_operand.vmem [shape: f32[256,1], index: 3, kind: input, shape index: {}]   ;;  %s3238_s4 = inlined_call_operand.vmem [shape: bf16[256,256], index: 4, kind: input, shape index: {}]   ;;  %s3239_s5 = inlined_call_operand.vmem [shape: f32[256,1], index: 5, kind: input, shape index: {}]   ;;  %s3240_s6 = inlined_call_operand.vmem [shape: f32[256,1], index: 6, kind: input, shape index: {}]   ;;  %s3241_s7 = inlined_call_operand.<no memory space> [shape: f32[1,1], index: 7, kind: input, shape index: {}]   ;;  %s3242_s8 = inlined_call_operand.hbm [shape: f32[1,256], index: 8, kind: output, shape index: {}]  }
   0x1   :  { %v79_v0 = vld [vmem:[%s3237_s3 + $0x20] sm:$0xff]  ;;  %v77_v1 = vld [vmem:[%s3237_s3 + $0x10] sm:$0xff]  ;;  %2128 = vset.pattern.permute.xlu2 %v2155_v3  ;;  %2127 = vset.pattern.permute.xlu1 %v2155_v3  ;;  %v80_v5 = vld [vmem:[%s3237_s3 + $0x28] sm:$0xff] }
   0x2   :  { %v75_v2 = vld [vmem:[%s3237_s3] sm:$0xff]  ;;  %2126 = vset.pattern.permute.xlu0 %v2155_v3  ;;  %129 = vperm.xlu2 %2128, %v79_v0   ;;  %v78_v6 = vld [vmem:[%s3237_s3 + $0x18] sm:$0xff]  ;;  %v76_v7 = vld [vmem:[%s3237_s3 + $0x8] sm:$0xff] }
   0x3   :  { %v34_v4 = vld [vmem:[%s3235_s1] sm:$0xff]  ;;  %119 = vperm.xlu1 %2127, %v77_v1   ;;  %109 = vperm.xlu0 %2126, %v75_v2   ;;  %v33_v9 = vld [vmem:[%s3234_s0 + $0x8] sm:$0xff] }
   0x4   :  { %36 = vst [vmem:[#allocation1] ss:$2 sm:$0xff] %v34_v4  ;;  %v32_v8 = vld [vmem:[%s3234_s0] sm:$0xff] }
   0x5   :  { %14 = vsyncpa [#allocation4], 0  ;;  %vm396_vm0 = vcmask 1045504   ;;  %v2066_v16 = vld [vmem:[%s3236_s2] sm:$0xff]  ;;  %v2075_v17 = vld [vmem:[%s3236_s2 + $0x48] sm:$0xff]  ;;  %vm347_vm1 = vcmask 97280  }
   0x6   :  { %v2238_v18 = vld [vmem:[%s3236_s2 + $0x40] sm:$0xff]  ;;  %v82_v20 = vld [vmem:[%s3237_s3 + $0x38] sm:$0xff]  ;;  %v81_v21 = vld [vmem:[%s3237_s3 + $0x30] sm:$0xff]  ;;  %s2156_s21 = smov [#allocation3]   ;;  %s1833_s24 = sshll.u32 %s3242_s8, 4  ;;  %vm1818_vm2 = vcmask 1040384   ;;  %s1834_s24 = int_to_ptr.hbm [resolvable:$true] %s1833_s24 }
   0x7   :  { %v83_v19 = vld [vmem:[%s3237_s3 + $0x40] sm:$0xff]  ;;  %v86_v22 = vld [vmem:[%s3237_s3 + $0x58] sm:$0xff]  ;;  %v85_v23 = vld [vmem:[%s3237_s3 + $0x50] sm:$0xff] }
   0x8   :  { %v84_v24 = vld [vmem:[%s3237_s3 + $0x48] sm:$0xff]  ;;  %v2076_v26 = vld [vmem:[%s3236_s2 + $0x50] sm:$0xff]  ;;  %v90_v27 = vld [vmem:[%s3237_s3 + $0x78] sm:$0xff] }
   0x9   :  { %v2067_v25 = vld [vmem:[%s3236_s2 + $0x8] sm:$0xff]  ;;  %v89_v28 = vld [vmem:[%s3237_s3 + $0x70] sm:$0xff]  ;;  %v87_v29 = vld [vmem:[%s3237_s3 + $0x60] sm:$0xff] }
   0xa   :  { %134 = vperm.xlu2 %2128, %v80_v5   ;;  %v106_v30 = vld [vmem:[%s3237_s3 + $0xf8] sm:$0xff]  ;;  %v105_v31 = vld [vmem:[%s3237_s3 + $0xf0] sm:$0xff]  ;;  %v88_v32 = vld [vmem:[%s3237_s3 + $0x68] sm:$0xff] }
   0xb   :  { %v37_v10 = vld.sshfl [vmem:[#allocation1] sm:$0xff pattern:$0x75316420]  ;;  %v38_v11 = vld.sshfl [vmem:[#allocation1 + $0x8] sm:$0xff pattern:$0x75316420]  ;;  %124 = vperm.xlu1 %2127, %v78_v6   ;;  %114 = vperm.xlu0 %2126, %v76_v7  }
   0xc   :  { %v41_v12 = vpack.c.bf16 %v37_v10, %v32_v8  ;;  %v42_v13 = vpack.c.bf16 %v38_v11, %v33_v9  ;;  %v2068_v33 = vld [vmem:[%s3236_s2 + $0x10] sm:$0xff]  ;;  %v2077_v34 = vld [vmem:[%s3236_s2 + $0x58] sm:$0xff]  ;;  %v104_v36 = vld [vmem:[%s3237_s3 + $0xe8] sm:$0xff] }
   0xd   :  { %v101_v35 = vld [vmem:[%s3237_s3 + $0xd0] sm:$0xff]  ;;  %v103_v37 = vld [vmem:[%s3237_s3 + $0xe0] sm:$0xff]  ;;  %v100_v38 = vld [vmem:[%s3237_s3 + $0xc8] sm:$0xff] }
   0xe   :  { %v398_v14 = vsel %vm396_vm0, %v41_v12, 0  ;;  %v401_v15 = vsel %vm396_vm0, %v42_v13, 0  ;;  %v99_v39 = vld [vmem:[%s3237_s3 + $0xc0] sm:$0xff]  ;;  %v102_v40 = vld [vmem:[%s3237_s3 + $0xd8] sm:$0xff]  ;;  %v97_v45 = vld [vmem:[%s3237_s3 + $0xb0] sm:$0xff] }
   0xf   :  { %410 = vmatpush.bf16.msra.mxu0 %v398_v14  ;;  %2114 = vmatpush.bf16.msra.mxu2 %v398_v14  ;;  %v2069_v41 = vld [vmem:[%s3236_s2 + $0x18] sm:$0xff]  ;;  %v2078_v42 = vld [vmem:[%s3236_s2 + $0x60] sm:$0xff]  ;;  %v93_v47 = vld [vmem:[%s3237_s3 + $0x90] sm:$0xff] }
  0x10   :  { %499 = vmatpush.bf16.msra.mxu1 %v401_v15  ;;  %2115 = vmatpush.bf16.msra.mxu3 %v401_v15  ;;  %v95_v43 = vld [vmem:[%s3237_s3 + $0xa0] sm:$0xff]  ;;  %v98_v44 = vld [vmem:[%s3237_s3 + $0xb8] sm:$0xff]  ;;  %v96_v48 = vld [vmem:[%s3237_s3 + $0xa8] sm:$0xff] }
  0x11   :  { %v94_v46 = vld [vmem:[%s3237_s3 + $0x98] sm:$0xff]  ;;  %v2070_v49 = vld [vmem:[%s3236_s2 + $0x20] sm:$0xff]  ;;  %v2079_v50 = vld [vmem:[%s3236_s2 + $0x68] sm:$0xff] }
  0x12   :  { %1906 = vmatmul.msk.bf16.vlgmr.msra.gmra.mxu0 %vm347_vm1, %v2066_v16  ;;  %1915 = vmatmul.msk.bf16.vlgmr.msra.gmra.mxu2 %vm347_vm1, %v2075_v17  ;;  %v709_v51 = vld [vmem:[%s3239_s5] sm:$0xff]  ;;  %v92_v52 = vld [vmem:[%s3237_s3 + $0x88] sm:$0xff]  ;;  %v712_v54 = vld [vmem:[%s3239_s5 + $0x18] sm:$0xff] }
  0x13   :  { %1922 = vmatmul.msk.bf16.vlgmr.msra.gmra.mxu1 %vm347_vm1, %v2066_v16  ;;  %1930 = vmatmul.msk.bf16.vlgmr.msra.gmra.mxu3 %vm347_vm1, %v2238_v18  ;;  %v91_v53 = vld [vmem:[%s3237_s3 + $0x80] sm:$0xff]  ;;  %v711_v55 = vld [vmem:[%s3239_s5 + $0x10] sm:$0xff]  ;;  %v710_v56 = vld [vmem:[%s3239_s5 + $0x8] sm:$0xff] }
  0x14   :  { %149 = vperm.xlu2 %2128, %v83_v19   ;;  %144 = vperm.xlu1 %2127, %v82_v20   ;;  %v2071_v57 = vld [vmem:[%s3236_s2 + $0x28] sm:$0xff]  ;;  %v2080_v58 = vld [vmem:[%s3236_s2 + $0x70] sm:$0xff]  ;;  %v713_v61 = vld [vmem:[%s3239_s5 + $0x20] sm:$0xff] }
  0x15   :  { %139 = vperm.xlu0 %2126, %v81_v21   ;;  %v715_v59 = vld [vmem:[%s3239_s5 + $0x30] sm:$0xff]  ;;  %v714_v60 = vld [vmem:[%s3239_s5 + $0x28] sm:$0xff]  ;;  %v717_v63 = vld [vmem:[%s3239_s5 + $0x40] sm:$0xff] }
  0x16   :  { %v718_v62 = vld [vmem:[%s3239_s5 + $0x48] sm:$0xff]  ;;  %v716_v0 = vld [vmem:[%s3239_s5 + $0x38] sm:$0xff]  ;;  %v2072_v1 = vld [vmem:[%s3236_s2 + $0x30] sm:$0xff] }
  0x17   :  { %v2081_v2 = vld [vmem:[%s3236_s2 + $0x78] sm:$0xff]  ;;  %v721_v3 = vld [vmem:[%s3239_s5 + $0x60] sm:$0xff]  ;;  %v719_v5 = vld [vmem:[%s3239_s5 + $0x50] sm:$0xff] }
  0x18   :  { %v720_v4 = vld [vmem:[%s3239_s5 + $0x58] sm:$0xff]  ;;  %v723_v7 = vld [vmem:[%s3239_s5 + $0x70] sm:$0xff]  ;;  %v722_v8 = vld [vmem:[%s3239_s5 + $0x68] sm:$0xff] }
  0x19   :  { %v724_v6 = vld [vmem:[%s3239_s5 + $0x78] sm:$0xff]  ;;  %v727_v10 = vld [vmem:[%s3239_s5 + $0x90] sm:$0xff]  ;;  %v726_v11 = vld [vmem:[%s3239_s5 + $0x88] sm:$0xff] }
  0x1a   :  { %v2073_v9 = vld [vmem:[%s3236_s2 + $0x38] sm:$0xff]  ;;  %v725_v12 = vld [vmem:[%s3239_s5 + $0x80] sm:$0xff]  ;;  %v730_v13 = vld [vmem:[%s3239_s5 + $0xa8] sm:$0xff]  ;;  %s1831_s2 = sshll.u32 %s2156_s21, 4  ;;  %s1832_s2 = int_to_ptr.vmem [resolvable:$true] %s1831_s2 }
  0x1b   :  { %v729_v14 = vld [vmem:[%s3239_s5 + $0xa0] sm:$0xff]  ;;  %v728_v15 = vld [vmem:[%s3239_s5 + $0x98] sm:$0xff] }
  0x1c   :  { %164 = vperm.xlu2 %2128, %v86_v22   ;;  %159 = vperm.xlu1 %2127, %v85_v23   ;;  %v733_v22 = vld [vmem:[%s3239_s5 + $0xc0] sm:$0xff]  ;;  %v732_v23 = vld [vmem:[%s3239_s5 + $0xb8] sm:$0xff] }
  0x1d   :  { %154 = vperm.xlu0 %2126, %v84_v24   ;;  %v731_v24 = vld [vmem:[%s3239_s5 + $0xb0] sm:$0xff] }
  0x22   :  { %1907 = vmatmul.msk.bf16.gmra.mxu0 %vm347_vm1, %v2067_v25  ;;  %1916 = vmatmul.msk.bf16.gmra.mxu2 %vm347_vm1, %v2076_v26 }
  0x23   :  { %1923 = vmatmul.msk.bf16.gmra.mxu1 %vm347_vm1, %v2067_v25  ;;  %1931 = vmatmul.msk.bf16.gmra.mxu3 %vm347_vm1, %v2075_v17 }
  0x24   :  { %184 = vperm.xlu2 %2128, %v90_v27   ;;  %179 = vperm.xlu1 %2127, %v89_v28  }
  0x25   :  { %169 = vperm.xlu0 %2126, %v87_v29  }
  0x2c   :  { %264 = vperm.xlu2 %2128, %v106_v30   ;;  %259 = vperm.xlu1 %2127, %v105_v31  }
  0x2d   :  { %174 = vperm.xlu0 %2126, %v88_v32  }
  0x32   :  { %1908 = vmatmul.msk.bf16.gmra.mxu0 %vm347_vm1, %v2068_v33  ;;  %1917 = vmatmul.msk.bf16.gmra.mxu2 %vm347_vm1, %v2077_v34 }
  0x33   :  { %1924 = vmatmul.msk.bf16.gmra.mxu1 %vm347_vm1, %v2068_v33  ;;  %1932 = vmatmul.msk.bf16.gmra.mxu3 %vm347_vm1, %v2076_v26  ;;  %v735_v33 = vld [vmem:[%s3239_s5 + $0xd0] sm:$0xff] }
  0x34   :  { %239 = vperm.xlu2 %2128, %v101_v35   ;;  %254 = vperm.xlu1 %2127, %v104_v36  }
  0x35   :  { %249 = vperm.xlu0 %2126, %v103_v37  }
  0x3c   :  { %234 = vperm.xlu2 %2128, %v100_v38   ;;  %229 = vperm.xlu1 %2127, %v99_v39  }
  0x3d   :  { %244 = vperm.xlu0 %2126, %v102_v40  }
  0x42   :  { %1909 = vmatmul.msk.bf16.gmra.mxu0 %vm347_vm1, %v2069_v41  ;;  %1918 = vmatmul.msk.bf16.gmra.mxu2 %vm347_vm1, %v2078_v42 }
  0x43   :  { %1925 = vmatmul.msk.bf16.gmra.mxu1 %vm347_vm1, %v2069_v41  ;;  %1933 = vmatmul.msk.bf16.gmra.mxu3 %vm347_vm1, %v2077_v34  ;;  %v734_v34 = vld [vmem:[%s3239_s5 + $0xc8] sm:$0xff] }
  0x44   :  { %209 = vperm.xlu2 %2128, %v95_v43   ;;  %224 = vperm.xlu1 %2127, %v98_v44  }
  0x45   :  { %219 = vperm.xlu0 %2126, %v97_v45  }
  0x4c   :  { %204 = vperm.xlu2 %2128, %v94_v46   ;;  %199 = vperm.xlu1 %2127, %v93_v47   ;;  %v739_v47 = vld [vmem:[%s3239_s5 + $0xf0] sm:$0xff] }
  0x4d   :  { %214 = vperm.xlu0 %2126, %v96_v48   ;;  %v738_v48 = vld [vmem:[%s3239_s5 + $0xe8] sm:$0xff] }
  0x52   :  { %1910 = vmatmul.msk.bf16.gmra.mxu0 %vm347_vm1, %v2070_v49  ;;  %1919 = vmatmul.msk.bf16.gmra.mxu2 %vm347_vm1, %v2079_v50 }
  0x53   :  { %1926 = vmatmul.msk.bf16.gmra.mxu1 %vm347_vm1, %v2070_v49  ;;  %1934 = vmatmul.msk.bf16.gmra.mxu3 %vm347_vm1, %v2078_v42  ;;  %v737_v49 = vld [vmem:[%s3239_s5 + $0xe0] sm:$0xff] }
  0x54   :  { %743 = vperm.xlu2 %2128, %v709_v51   ;;  %194 = vperm.xlu1 %2127, %v92_v52  }
  0x55   :  { %189 = vperm.xlu0 %2126, %v91_v53  }
  0x5c   :  { %758 = vperm.xlu2 %2128, %v712_v54   ;;  %753 = vperm.xlu1 %2127, %v711_v55  }
  0x5d   :  { %748 = vperm.xlu0 %2126, %v710_v56  }
  0x62   :  { %1911 = vmatmul.msk.bf16.gmra.mxu0 %vm347_vm1, %v2071_v57  ;;  %1920 = vmatmul.msk.bf16.gmra.mxu2 %vm347_vm1, %v2080_v58 }
  0x63   :  { %1927 = vmatmul.msk.bf16.gmra.mxu1 %vm347_vm1, %v2071_v57  ;;  %1935 = vmatmul.msk.bf16.gmra.mxu3 %vm347_vm1, %v2079_v50  ;;  %v130_v50 = vpop.permute.xlu2 %129 }
  0x64   :  { %773 = vperm.xlu2 %2128, %v715_v59   ;;  %768 = vperm.xlu1 %2127, %v714_v60   ;;  %v1482_v59 = vld [vmem:[%s3240_s6 + $0x8] sm:$0xff]  ;;  %v1481_v60 = vld [vmem:[%s3240_s6] sm:$0xff] }
  0x65   :  { %763 = vperm.xlu0 %2126, %v713_v61   ;;  %v740_v61 = vld [vmem:[%s3239_s5 + $0xf8] sm:$0xff] }
  0x6c   :  { %788 = vperm.xlu2 %2128, %v718_v62   ;;  %783 = vperm.xlu1 %2127, %v717_v63  }
  0x6d   :  { %778 = vperm.xlu0 %2126, %v716_v0  }
  0x72   :  { %1912 = vmatmul.msk.bf16.gmra.mxu0 %vm347_vm1, %v2072_v1  ;;  %1921 = vmatmul.msk.bf16.gmra.mxu2 %vm347_vm1, %v2081_v2 }
  0x73   :  { %1928 = vmatmul.msk.bf16.gmra.mxu1 %vm347_vm1, %v2072_v1  ;;  %1936 = vmatmul.msk.bf16.gmra.mxu3 %vm347_vm1, %v2080_v58 }
  0x74   :  { %803 = vperm.xlu2 %2128, %v721_v3   ;;  %798 = vperm.xlu1 %2127, %v720_v4  }
  0x75   :  { %793 = vperm.xlu0 %2126, %v719_v5   ;;  %v110_v16 = vpop.permute.xlu0 %109  ;;  %v120_v38 = vpop.permute.xlu1 %119 }
  0x76   :  { %v135_v5 = vpop.permute.xlu2 %134 }
  0x7c   :  { %818 = vperm.xlu2 %2128, %v724_v6   ;;  %813 = vperm.xlu1 %2127, %v723_v7  }
  0x7d   :  { %808 = vperm.xlu0 %2126, %v722_v8   ;;  %v115_v27 = vpop.permute.xlu0 %114  ;;  %v125_v53 = vpop.permute.xlu1 %124  ;;  %v1485_v8 = vld [vmem:[%s3240_s6 + $0x20] sm:$0xff] }
  0x82   :  { %1913 = vmatmul.msk.bf16.gmra.mxu0 %vm347_vm1, %v2073_v9 }
  0x83   :  { %1929 = vmatmul.msk.bf16.gmra.mxu1 %vm347_vm1, %v2073_v9  ;;  %1937 = vmatmul.msk.bf16.gmra.mxu3 %vm347_vm1, %v2081_v2  ;;  %v1484_v9 = vld [vmem:[%s3240_s6 + $0x18] sm:$0xff] }
  0x84   :  { %833 = vperm.xlu2 %2128, %v727_v10   ;;  %828 = vperm.xlu1 %2127, %v726_v11   ;;  %v1483_v10 = vld [vmem:[%s3240_s6 + $0x10] sm:$0xff] }
  0x85   :  { %823 = vperm.xlu0 %2126, %v725_v12  }
  0x8c   :  { %848 = vperm.xlu2 %2128, %v730_v13   ;;  %843 = vperm.xlu1 %2127, %v729_v14  }
  0x8d   :  { %838 = vperm.xlu0 %2126, %v728_v15  }
  0x8f   :  { %v412_v17 = vpop.f32.mrf.mxu0 }
  0x90   :  { %v413_v19 = vadd.f32 %v412_v17, %v110_v16  ;;  %v501_v20 = vpop.f32.mrf.mxu1  ;;  %v2530_v17 = vpop.permute.xlu2 %149 }
  0x91   :  { %v502_v21 = vadd.f32 %v501_v20, %v110_v16 }
  0x92   :  { %1914 = vmatmul.msk.bf16.gmra.mxu0 %vm347_vm1, %v2238_v18  ;;  %v736_v18 = vld [vmem:[%s3239_s5 + $0xd8] sm:$0xff]  ;;  %v581_v35 = vmax.f32 %v413_v19, 0.0 }
  0x93   :  { %v582_v30 = vmax.f32 %v502_v21, 0.0 }
  0x94   :  { %863 = vperm.xlu2 %2128, %v733_v22   ;;  %858 = vperm.xlu1 %2127, %v732_v23   ;;  %v1488_v22 = vld [vmem:[%s3240_s6 + $0x38] sm:$0xff]  ;;  %v1487_v23 = vld [vmem:[%s3240_s6 + $0x30] sm:$0xff] }
  0x95   :  { %853 = vperm.xlu0 %2126, %v731_v24   ;;  %v2466_v25 = vpop.f32.mrf.mxu2  ;;  %v1486_v24 = vld [vmem:[%s3240_s6 + $0x28] sm:$0xff] }
  0x96   :  { %v2468_v26 = vpop.f32.mrf.mxu3 }
  0x97   :  { %3249 = vst [vmem:[#allocation6_spill] sm:$0xff] %v2468_v26  ;;  %v414_v28 = vpop.f32.mrf.mxu0 }
  0x98   :  { %v503_v29 = vpop.f32.mrf.mxu1  ;;  %v415_v31 = vadd.f32 %v414_v28, %v115_v27 }
  0x99   :  { %v504_v32 = vadd.f32 %v503_v29, %v115_v27 }
  0x9a   :  { %v583_v36 = vmax.f32 %v415_v31, 0.0 }
  0x9b   :  { %v584_v37 = vmax.f32 %v504_v32, 0.0 }
  0x9c   :  { %878 = vperm.xlu2 %2128, %v736_v18   ;;  %873 = vperm.xlu1 %2127, %v735_v33   ;;  %v2481_v40 = vpack.c.bf16 %v583_v36, %v581_v35  ;;  %v2555_v36 = vpop.permute.xlu0 %139 }
  0x9d   :  { %868 = vperm.xlu0 %2126, %v734_v34   ;;  %v2479_v39 = vpop.f32.mrf.mxu2  ;;  %v2483_v41 = vpack.c.bf16 %v584_v37, %v582_v30  ;;  %v2541_v30 = vpop.permute.xlu1 %144  ;;  %v1491_v37 = vld [vmem:[%s3240_s6 + $0x50] sm:$0xff] }
  0x9e   :  { %3250 = vst [vmem:[#allocation7_spill] sm:$0xff] %v2481_v40  ;;  %v2485_v42 = vpop.f32.mrf.mxu3  ;;  %v1508_v40 = vld [vmem:[%s3240_s6 + $0xd8] sm:$0xff] }
  0x9f   :  { %3251 = vst [vmem:[#allocation8_spill] sm:$0xff] %v2483_v41  ;;  %v417_v43 = vpop.f32.mrf.mxu0  ;;  %v1509_v41 = vld [vmem:[%s3240_s6 + $0xe0] sm:$0xff] }
  0xa0   :  { %3252 = vst [vmem:[#allocation9_spill] sm:$0xff] %v2485_v42  ;;  %v506_v44 = vpop.f32.mrf.mxu1  ;;  %v418_v45 = vadd.f32 %v417_v43, %v120_v38  ;;  %v1489_v43 = vld [vmem:[%s3240_s6 + $0x40] sm:$0xff] }
  0xa1   :  { %v507_v46 = vadd.f32 %v506_v44, %v120_v38  ;;  %v1490_v38 = vld [vmem:[%s3240_s6 + $0x48] sm:$0xff]  ;;  %v2566_v44 = vpop.permute.xlu2 %164 }
  0xa2   :  { %v585_v62 = vmax.f32 %v418_v45, 0.0 }
  0xa3   :  { %v586_v56 = vmax.f32 %v507_v46, 0.0 }
  0xa4   :  { %893 = vperm.xlu2 %2128, %v739_v47   ;;  %888 = vperm.xlu1 %2127, %v738_v48  }
  0xa5   :  { %883 = vperm.xlu0 %2126, %v737_v49   ;;  %v2496_v51 = vpop.f32.mrf.mxu2  ;;  %v2572_v47 = vpop.permute.xlu1 %159 }
  0xa6   :  { %v2498_v52 = vpop.f32.mrf.mxu3 }
  0xa7   :  { %3253 = vst [vmem:[#allocation10_spill] sm:$0xff] %v2498_v52  ;;  %v419_v54 = vpop.f32.mrf.mxu0 }
  0xa8   :  { %v508_v55 = vpop.f32.mrf.mxu1  ;;  %v420_v57 = vadd.f32 %v419_v54, %v125_v53  ;;  %v1492_v54 = vld [vmem:[%s3240_s6 + $0x58] sm:$0xff] }
  0xa9   :  { %v509_v58 = vadd.f32 %v508_v55, %v125_v53  ;;  %v1493_v53 = vld [vmem:[%s3240_s6 + $0x60] sm:$0xff]  ;;  %v2587_v55 = vpop.permute.xlu0 %154 }
  0xaa   :  { %v587_v63 = vmax.f32 %v420_v57, 0.0 }
  0xab   :  { %v588_v0 = vmax.f32 %v509_v58, 0.0 }
  0xac   :  { %1520 = vperm.xlu2 %2128, %v1482_v59   ;;  %1515 = vperm.xlu1 %2127, %v1481_v60   ;;  %v2511_v2 = vpack.c.bf16 %v587_v63, %v585_v62  ;;  %v1497_v62 = vld [vmem:[%s3240_s6 + $0x80] sm:$0xff]  ;;  %v1496_v63 = vld [vmem:[%s3240_s6 + $0x78] sm:$0xff] }
  0xad   :  { %898 = vperm.xlu0 %2126, %v740_v61   ;;  %v2509_v1 = vpop.f32.mrf.mxu2  ;;  %v2513_v3 = vpack.c.bf16 %v588_v0, %v586_v56  ;;  %v2589_v56 = vpop.permute.xlu2 %184  ;;  %v1495_v0 = vld [vmem:[%s3240_s6 + $0x70] sm:$0xff] }
  0xae   :  { %3254 = vst [vmem:[#allocation11_spill] sm:$0xff] %v2511_v2  ;;  %v2515_v4 = vpop.f32.mrf.mxu3  ;;  %v2599_v61 = vpop.permute.xlu1 %179 }
  0xaf   :  { %3255 = vst [vmem:[#allocation12_spill] sm:$0xff] %v2513_v3  ;;  %v422_v6 = vpop.f32.mrf.mxu0 }
  0xb0   :  { %3256 = vst [vmem:[#allocation13_spill] sm:$0xff] %v2515_v4  ;;  %v511_v7 = vpop.f32.mrf.mxu1  ;;  %v423_v14 = vadd.f32 %v422_v6, %v130_v50  ;;  %v1512_v4 = vld [vmem:[%s3240_s6 + $0xf8] sm:$0xff] }
  0xb1   :  { %v512_v11 = vadd.f32 %v511_v7, %v130_v50  ;;  %v1494_v50 = vld [vmem:[%s3240_s6 + $0x68] sm:$0xff] }
  0xb2   :  { %v589_v27 = vmax.f32 %v423_v14, 0.0  ;;  %v1499_v14 = vld [vmem:[%s3240_s6 + $0x90] sm:$0xff] }
  0xb3   :  { %v590_v19 = vmax.f32 %v512_v11, 0.0  ;;  %v1500_v11 = vld [vmem:[%s3240_s6 + $0x98] sm:$0xff] }
  0xb4   :  { %1535 = vperm.xlu2 %2128, %v1485_v8   ;;  %1530 = vperm.xlu1 %2127, %v1484_v9  }
  0xb5   :  { %1525 = vperm.xlu0 %2126, %v1483_v10   ;;  %v2526_v12 = vpop.f32.mrf.mxu2  ;;  %v2616_v8 = vpop.permute.xlu2 %264 }
  0xb6   :  { %v2528_v13 = vpop.f32.mrf.mxu3 }
  0xb7   :  { %3257 = vst [vmem:[#allocation14_spill] sm:$0xff] %v2528_v13  ;;  %v424_v15 = vpop.f32.mrf.mxu0 }
  0xb8   :  { %v513_v16 = vpop.f32.mrf.mxu1  ;;  %v425_v20 = vadd.f32 %v424_v15, %v135_v5  ;;  %v1498_v15 = vld [vmem:[%s3240_s6 + $0x88] sm:$0xff] }
  0xb9   :  { %v514_v21 = vadd.f32 %v513_v16, %v135_v5  ;;  %v2610_v5 = vpop.permute.xlu0 %169  ;;  %v2631_v16 = vpop.permute.xlu1 %259 }
  0xba   :  { %v591_v28 = vmax.f32 %v425_v20, 0.0 }
  0xbb   :  { %v592_v29 = vmax.f32 %v514_v21, 0.0 }
  0xbc   :  { %1550 = vperm.xlu2 %2128, %v1488_v22   ;;  %1545 = vperm.xlu1 %2127, %v1487_v23   ;;  %v2545_v32 = vpack.c.bf16 %v591_v28, %v589_v27  ;;  %v1503_v27 = vld [vmem:[%s3240_s6 + $0xb0] sm:$0xff]  ;;  %v1502_v28 = vld [vmem:[%s3240_s6 + $0xa8] sm:$0xff] }
  0xbd   :  { %1540 = vperm.xlu0 %2126, %v1486_v24   ;;  %v2543_v31 = vpop.f32.mrf.mxu2  ;;  %v2547_v18 = vpack.c.bf16 %v592_v29, %v590_v19  ;;  %v2643_v24 = vpop.permute.xlu2 %239  ;;  %v1501_v29 = vld [vmem:[%s3240_s6 + $0xa0] sm:$0xff] }
  0xbe   :  { %3258 = vst [vmem:[#allocation15_spill] sm:$0xff] %v2545_v32  ;;  %v2549_v33 = vpop.f32.mrf.mxu3 }
  0xbf   :  { %3259 = vst [vmem:[#allocation16_spill] sm:$0xff] %v2547_v18  ;;  %v2551_v34 = vpop.f32.mrf.mxu0  ;;  %v1511_v18 = vld [vmem:[%s3240_s6 + $0xf0] sm:$0xff] }
  0xc0   :  { %3260 = vst [vmem:[#allocation17_spill] sm:$0xff] %v2549_v33  ;;  %v2553_v35 = vpop.f32.mrf.mxu1 }
  0xc1   :  { %3261 = vst [vmem:[#allocation18_spill] sm:$0xff] %v2551_v34  ;;  %v2637_v21 = vpop.permute.xlu0 %174 }
  0xc4   :  { %1565 = vperm.xlu2 %2128, %v1491_v37   ;;  %1560 = vperm.xlu1 %2127, %v1490_v38   ;;  %v2654_v37 = vpop.permute.xlu1 %254 }
  0xc5   :  { %1555 = vperm.xlu0 %2126, %v1489_v43   ;;  %v2568_v45 = vpop.f32.mrf.mxu2 }
  0xc6   :  { %v2570_v46 = vpop.f32.mrf.mxu3 }
  0xc7   :  { %3262 = vst [vmem:[#allocation19_spill] sm:$0xff] %v2570_v46  ;;  %v2574_v48 = vpop.f32.mrf.mxu0 }
  0xc8   :  { %v2576_v49 = vpop.f32.mrf.mxu1 }
  0xcc   :  { %1580 = vperm.xlu2 %2128, %v1494_v50   ;;  %1575 = vperm.xlu1 %2127, %v1493_v53  }
  0xcd   :  { %1570 = vperm.xlu0 %2126, %v1492_v54   ;;  %v2591_v57 = vpop.f32.mrf.mxu2  ;;  %v2662_v54 = vpop.permute.xlu0 %249 }
  0xce   :  { %v2593_v58 = vpop.f32.mrf.mxu3 }
  0xcf   :  { %3263 = vst [vmem:[#allocation20_spill] sm:$0xff] %v2593_v58  ;;  %v2595_v59 = vpop.f32.mrf.mxu0 }
  0xd0   :  { %v2597_v60 = vpop.f32.mrf.mxu1 }
  0xd4   :  { %1595 = vperm.xlu2 %2128, %v1497_v62   ;;  %1590 = vperm.xlu1 %2127, %v1496_v63   ;;  %v1506_v62 = vld [vmem:[%s3240_s6 + $0xc8] sm:$0xff]  ;;  %v1505_v63 = vld [vmem:[%s3240_s6 + $0xc0] sm:$0xff] }
  0xd5   :  { %1585 = vperm.xlu0 %2126, %v1495_v0   ;;  %v2612_v6 = vpop.f32.mrf.mxu2  ;;  %v1504_v0 = vld [vmem:[%s3240_s6 + $0xb8] sm:$0xff] }
  0xd6   :  { %v2614_v7 = vpop.f32.mrf.mxu3 }
  0xd7   :  { %3264 = vst [vmem:[#allocation21_spill] sm:$0xff] %v2614_v7  ;;  %v2618_v9 = vpop.f32.mrf.mxu0 }
  0xd8   :  { %v2620_v10 = vpop.f32.mrf.mxu1 }
  0xdc   :  { %1610 = vperm.xlu2 %2128, %v1500_v11   ;;  %1605 = vperm.xlu1 %2127, %v1499_v14   ;;  %v2673_v11 = vpop.permute.xlu2 %234 }
  0xdd   :  { %1600 = vperm.xlu0 %2126, %v1498_v15   ;;  %v2633_v19 = vpop.f32.mrf.mxu2 }
  0xde   :  { %v2635_v20 = vpop.f32.mrf.mxu3 }
  0xdf   :  { %3265 = vst [vmem:[#allocation22_spill] sm:$0xff] %v2635_v20  ;;  %v2639_v22 = vpop.f32.mrf.mxu0 }
  0xe0   :  { %v2641_v23 = vpop.f32.mrf.mxu1 }
  0xe4   :  { %1625 = vperm.xlu2 %2128, %v1503_v27   ;;  %1620 = vperm.xlu1 %2127, %v1502_v28   ;;  %v2677_v27 = vpop.permute.xlu1 %229 }
  0xe5   :  { %1615 = vperm.xlu0 %2126, %v1501_v29   ;;  %v482_v38 = vpop.f32.mrf.mxu2 }
  0xe6   :  { %v2656_v43 = vpop.f32.mrf.mxu3  ;;  %v483_v20 = vadd.f32 %v482_v38, %v2662_v54 }
  0xe7   :  { %3266 = vst [vmem:[#allocation23_spill] sm:$0xff] %v2656_v43  ;;  %v2658_v50 = vpop.f32.mrf.mxu0 }
  0xe8   :  { %v2660_v53 = vpop.f32.mrf.mxu1 }
  0xec   :  { %1640 = vperm.xlu2 %2128, %v1506_v62   ;;  %1635 = vperm.xlu1 %2127, %v1505_v63   ;;  %v1507_v62 = vld [vmem:[%s3240_s6 + $0xd0] sm:$0xff]  ;;  %v2692_v63 = vpop.permute.xlu0 %244  ;;  %v2704_v32 = vpop.permute.xlu1 %224 }
  0xed   :  { %1630 = vperm.xlu0 %2126, %v1504_v0   ;;  %v484_v14 = vpop.f32.mrf.mxu2  ;;  %v2694_v0 = vpop.permute.xlu2 %209  ;;  %3268 = vst [vmem:[#allocation25_spill] sm:$0xff] %v2704_v32 }
  0xee   :  { %v2675_v15 = vpop.f32.mrf.mxu3  ;;  %3267 = vst [vmem:[#allocation24_spill] sm:$0xff] %v2694_v0  ;;  %v485_v33 = vadd.f32 %v484_v14, %v2654_v37  ;;  %v478_v14 = vadd.f32 %v2612_v6, %v2643_v24 }
  0xef   :  { %v2679_v28 = vpop.f32.mrf.mxu0 }
  0xf0   :  { %v2681_v29 = vpop.f32.mrf.mxu1  ;;  %v639_v38 = vmax.f32 %v485_v33, 0.0 }
  0xf4   :  { %1655 = vperm.xlu2 %2128, %v1509_v41   ;;  %1650 = vperm.xlu1 %2127, %v1508_v40   ;;  %v1510_v40 = vld [vmem:[%s3240_s6 + $0xe8] sm:$0xff] }
  0xf5   :  { %1645 = vperm.xlu0 %2126, %v1507_v62   ;;  %v487_v3 = vpop.f32.mrf.mxu2  ;;  %v2710_v62 = vpop.permute.xlu0 %219 }
  0xf6   :  { %v2696_v2 = vpop.f32.mrf.mxu3  ;;  %v488_v41 = vadd.f32 %v487_v3, %v2631_v16  ;;  %v2716_v46 = vpop.permute.xlu2 %204 }
  0xf7   :  { %v444_v26 = vpop.f32.mrf.mxu0  ;;  %3269 = vst [vmem:[#allocation26_spill] sm:$0xff] %v2716_v46 }
  0xf8   :  { %v533_v42 = vpop.f32.mrf.mxu1  ;;  %v641_v7 = vmax.f32 %v488_v41, 0.0  ;;  %v2739_v41 = vpop.permute.xlu1 %199 }
  0xfc   :  { %1670 = vperm.xlu2 %2128, %v1512_v4   ;;  %1665 = vperm.xlu1 %2127, %v1511_v18   ;;  %v2721_v4 = vadd.f32 %v2496_v51, %v2694_v0  ;;  %v2725_v18 = vadd.f32 %v2479_v39, %v2716_v46  ;;  %v2737_v51 = vadd.f32 %v2543_v31, %v2704_v32  ;;  %v637_v46 = vmax.f32 %v483_v20, 0.0 }
  0xfd   :  { %1660 = vperm.xlu0 %2126, %v1510_v40   ;;  %v489_v52 = vpop.f32.mrf.mxu2  ;;  %v473_v39 = vadd.f32 %v2568_v45, %v2677_v27  ;;  %v2751_v45 = vadd.f32 %v2466_v25, %v2739_v41  ;;  %v2753_v20 = vpop.permute.xlu0 %214 }
  0xfe   :  { %v490_v13 = vadd.f32 %v489_v52, %v2616_v8  ;;  %v2714_v58 = vpop.f32.mrf.mxu3  ;;  %v2729_v52 = vadd.f32 %v2526_v12, %v2710_v62  ;;  %v705_v0 = vpack.c.bf16 %v639_v38, %v637_v46  ;;  %v627_v32 = vmax.f32 %v2737_v51, 0.0 }
  0xff   :  { %v447_v43 = vpop.f32.mrf.mxu0  ;;  %v629_v46 = vmax.f32 %v473_v39, 0.0  ;;  %v534_v51 = vadd.f32 %v533_v42, %v2637_v21  ;;  %v527_v42 = vadd.f32 %v2641_v23, %v2572_v47  ;;  %v2792_v23 = vadd.f32 %v2620_v10, %v2587_v55 }
 0x100   :  { %v643_v34 = vmax.f32 %v490_v13, 0.0  ;;  %v536_v3 = vpop.f32.mrf.mxu1  ;;  %v480_v13 = vadd.f32 %v2633_v19, %v2692_v63  ;;  %v475_v19 = vadd.f32 %v2591_v57, %v2673_v11  ;;  %v625_v33 = vmax.f32 %v2729_v52, 0.0 }
 0x101   :  { %v537_v6 = vadd.f32 %v536_v3, %v2599_v61  ;;  %v2759_v57 = vadd.f32 %v2509_v1, %v2753_v20  ;;  %v2763_v52 = vadd.f32 %v2553_v35, %v2555_v36  ;;  %v2771_v1 = vadd.f32 %v2597_v60, %v2530_v17 }
 0x102   :  { %v707_v40 = vpack.c.bf16 %v643_v34, %v641_v7  ;;  %v633_v34 = vmax.f32 %v478_v14, 0.0  ;;  %v635_v7 = vmax.f32 %v480_v13, 0.0  ;;  %v445_v14 = vadd.f32 %v444_v26, %v2637_v21 }
 0x103   :  { %v631_v38 = vmax.f32 %v475_v19, 0.0  ;;  %v443_v35 = vadd.f32 %v2679_v28, %v2610_v5  ;;  %v532_v26 = vadd.f32 %v2681_v29, %v2610_v5  ;;  %v529_v60 = vadd.f32 %v2660_v53, %v2566_v44 }
 0x104   :  { %1150 = vmatpush.bf16.msrb.mxu3 %v707_v40  ;;  %v448_v40 = vadd.f32 %v447_v43, %v2599_v61  ;;  %v703_v3 = vpack.c.bf16 %v635_v7, %v633_v34  ;;  %v607_v21 = vmax.f32 %v445_v14, 0.0  ;;  %v608_v28 = vmax.f32 %v534_v51, 0.0 }
 0x105   :  { %v701_v53 = vpack.c.bf16 %v631_v38, %v629_v46  ;;  %v605_v34 = vmax.f32 %v443_v35, 0.0  ;;  %v606_v7 = vmax.f32 %v532_v26, 0.0  ;;  %v3271_v35 = vld [vmem:[#allocation18_spill] sm:$0xff] }
 0x106   :  { %v576_v31 = vpop.f32.mrf.mxu3  ;;  %v609_v39 = vmax.f32 %v448_v40, 0.0  ;;  %v604_v40 = vmax.f32 %v529_v60, 0.0  ;;  %v195_v60 = vpop.permute.xlu1 %194 }
 0x107   :  { %v449_v13 = vpop.f32.mrf.mxu0  ;;  %v689_v46 = vpack.c.bf16 %v607_v21, %v605_v34  ;;  %v2802_v14 = vpack.c.bf16 %v608_v28, %v606_v7 }
 0x108   :  { %v538_v25 = vpop.f32.mrf.mxu1  ;;  %1151 = vmatpush.bf16.msrb.mxu3 %v705_v0  ;;  %v450_v43 = vadd.f32 %v449_v13, %v2589_v56  ;;  %v610_v0 = vmax.f32 %v537_v6, 0.0  ;;  %v577_v13 = vadd.f32 %v576_v31, %v2631_v16  ;;  %v2788_v6 = vadd.f32 %v2618_v9, %v2587_v55 }
 0x109   :  { %v539_v61 = vadd.f32 %v538_v25, %v2589_v56  ;;  %v440_v56 = vadd.f32 %v2658_v50, %v2566_v44  ;;  %v438_v50 = vadd.f32 %v2639_v22, %v2572_v47  ;;  %v574_v16 = vadd.f32 %v2714_v58, %v2654_v37 }
 0x10a   :  { %v611_v19 = vmax.f32 %v450_v43, 0.0  ;;  %v602_v9 = vmax.f32 %v527_v42, 0.0  ;;  %v572_v55 = vadd.f32 %v2696_v2, %v2662_v54  ;;  %v642_v47 = vmax.f32 %v577_v13, 0.0 }
 0x10b   :  { %v612_v12 = vmax.f32 %v539_v61, 0.0  ;;  %v603_v31 = vmax.f32 %v440_v56, 0.0  ;;  %v623_v58 = vmax.f32 %v2759_v57, 0.0  ;;  %v433_v37 = vadd.f32 %v2595_v59, %v2530_v17  ;;  %v3270_v17 = vld [vmem:[#allocation23_spill] sm:$0xff] }
 0x10c   :  { %1152 = vmatpush.bf16.msrb.mxu3 %v703_v3  ;;  %v691_v5 = vpack.c.bf16 %v611_v19, %v609_v39  ;;  %v699_v25 = vpack.c.bf16 %v627_v32, %v625_v33  ;;  %v601_v38 = vmax.f32 %v438_v50, 0.0  ;;  %v569_v2 = vadd.f32 %v2675_v15, %v2692_v63  ;;  %v190_v3 = vpop.permute.xlu0 %189  ;;  %v3273_v39 = vld [vmem:[#allocation21_spill] sm:$0xff] }
 0x10d   :  { %v2784_v29 = vpack.c.bf16 %v612_v12, %v610_v0  ;;  %v640_v54 = vmax.f32 %v574_v16, 0.0  ;;  %v519_v43 = vadd.f32 %v2576_v49, %v2541_v30  ;;  %v598_v57 = vmax.f32 %v2771_v1, 0.0 }
 0x10e   :  { %v578_v44 = vpop.f32.mrf.mxu3  ;;  %1061 = vmatpush.bf16.msrb.mxu2 %v691_v5  ;;  %v600_v61 = vmax.f32 %v2792_v23, 0.0  ;;  %v567_v32 = vadd.f32 %v3270_v17, %v2643_v24  ;;  %v638_v59 = vmax.f32 %v572_v55, 0.0  ;;  %v687_v15 = vpack.c.bf16 %v603_v31, %v601_v38  ;;  %v3274_v24 = vld [vmem:[#allocation22_spill] sm:$0xff]  ;;  %v3275_v23 = vld [vmem:[#allocation19_spill] sm:$0xff]  ;;  %v3284_v17 = vld [vmem:[#allocation16_spill] sm:$0xff] }
 0x10f   :  { %v579_v12 = vadd.f32 %v578_v44, %v2616_v8  ;;  %1239 = vmatpush.bf16.msrb.mxu0 %v2784_v29  ;;  %v452_v10 = vpop.f32.mrf.mxu0  ;;  %v430_v8 = vadd.f32 %v2574_v48, %v2541_v30  ;;  %v599_v48 = vmax.f32 %v2788_v6, 0.0  ;;  %v2819_v63 = vpack.c.bf16 %v604_v40, %v602_v9  ;;  %v3276_v44 = vld [vmem:[#allocation25_spill] sm:$0xff] }
 0x110   :  { %1153 = vmatpush.bf16.msrb.mxu3 %v701_v53  ;;  %v617_v33 = vmax.f32 %v2751_v45, 0.0  ;;  %v428_v30 = vadd.f32 %v3271_v35, %v2555_v36  ;;  %v597_v49 = vmax.f32 %v433_v37, 0.0  ;;  %v3272_v1 = vmax.f32 %v2721_v4, 0.0  ;;  %v3277_v53 = vld [vmem:[#allocation20_spill] sm:$0xff]  ;;  %v3287_v35 = vld [vmem:[#allocation9_spill] sm:$0xff] }
 0x111   :  { %v644_v22 = vmax.f32 %v579_v12, 0.0  ;;  %v562_v0 = vadd.f32 %v3273_v39, %v2677_v27  ;;  %v564_v19 = vadd.f32 %v3274_v24, %v2673_v11  ;;  %v636_v42 = vmax.f32 %v569_v2, 0.0  ;;  %v3290_v39 = vld [vmem:[#allocation12_spill] sm:$0xff]  ;;  %v2083_v24 = vld [vmem:[%s3238_s4 + $0x4] sm:$0xf0] }
 0x112   :  { %1062 = vmatpush.bf16.msrb.mxu2 %v689_v46  ;;  %v697_v26 = vpack.c.bf16 %v623_v58, %v3272_v1  ;;  %v706_v56 = vpack.c.bf16 %v640_v54, %v638_v59  ;;  %v594_v45 = vmax.f32 %v2763_v52, 0.0  ;;  %v595_v36 = vmax.f32 %v430_v8, 0.0  ;;  %v3281_v8 = vld [vmem:[#allocation17_spill] sm:$0xff] }
 0x113   :  { %1240 = vmatpush.bf16.msrb.mxu0 %v2802_v14  ;;  %v708_v51 = vpack.c.bf16 %v644_v22, %v642_v47  ;;  %v596_v21 = vmax.f32 %v519_v43, 0.0  ;;  %v453_v28 = vadd.f32 %v452_v10, %v190_v3  ;;  %v634_v13 = vmax.f32 %v567_v32, 0.0  ;;  %v3279_v47 = vld [vmem:[#allocation24_spill] sm:$0xff]  ;;  %v3280_v22 = vld [vmem:[#allocation14_spill] sm:$0xff]  ;;  %v3286_v59 = vld [vmem:[#allocation13_spill] sm:$0xff] }
 0x114   :  { %1154 = vmatpush.bf16.msrb.mxu3 %v699_v25  ;;  %v685_v27 = vpack.c.bf16 %v599_v48, %v597_v49  ;;  %v2832_v6 = vpack.c.bf16 %v600_v61, %v598_v57  ;;  %v593_v11 = vmax.f32 %v428_v30, 0.0  ;;  %v557_v50 = vadd.f32 %v3275_v23, %v2710_v62  ;;  %v2082_v62 = vld [vmem:[%s3238_s4 + $0x4] sm:$0xf]  ;;  %v3282_v43 = vld [vmem:[#allocation10_spill] sm:$0xff]  ;;  %v3283_v61 = vld [vmem:[#allocation15_spill] sm:$0xff] }
 0x115   :  { %1328 = vmatpush.bf16.msrb.mxu1 %v708_v51  ;;  %v559_v34 = vadd.f32 %v3277_v53, %v3276_v44  ;;  %v3278_v52 = vmax.f32 %v2725_v18, 0.0  ;;  %v630_v16 = vmax.f32 %v562_v0, 0.0  ;;  %v632_v12 = vmax.f32 %v564_v19, 0.0  ;;  %v1942_v18 = vld [vmem:[%s3238_s4 + $0x8] sm:$0xf0]  ;;  %v2900_v44 = vpop.permute.xlu2 %743 }
 0x116   :  { %1063 = vmatpush.bf16.msrb.mxu2 %v687_v15  ;;  %v704_v31 = vpack.c.bf16 %v636_v42, %v634_v13  ;;  %v613_v40 = vmax.f32 %v453_v28, 0.0  ;;  %v683_v55 = vpack.c.bf16 %v595_v36, %v593_v11  ;;  %v684_v10 = vpack.c.bf16 %v596_v21, %v594_v45  ;;  %v3288_v49 = vld [vmem:[#allocation6_spill] sm:$0xff]  ;;  %v1940_v0 = vld [vmem:[%s3238_s4] sm:$0xf]  ;;  %v2084_v21 = vld [vmem:[%s3238_s4 + $0x14] sm:$0xf] }
 0x117   :  { %1241 = vmatpush.bf16.msrb.mxu0 %v2819_v63  ;;  %v454_v4 = vpop.f32.mrf.mxu0  ;;  %v695_v7 = vpack.c.bf16 %v3278_v52, %v617_v33  ;;  %v552_v46 = vadd.f32 %v3280_v22, %v3279_v47  ;;  %v554_v37 = vadd.f32 %v3281_v8, %v2753_v20  ;;  %v626_v25 = vmax.f32 %v557_v50, 0.0  ;;  %v3285_v20 = vld [vmem:[#allocation26_spill] sm:$0xff]  ;;  %v1950_v28 = vld [vmem:[%s3238_s4 + $0x18] sm:$0xf0]  ;;  %v2088_v53 = vld [vmem:[%s3238_s4 + $0x34] sm:$0xf] }
 0x118   :  { %1155 = vmatpush.bf16.msrb.mxu3 %v697_v26  ;;  %v455_v5 = vadd.f32 %v454_v4, %v195_v60  ;;  %v628_v38 = vmax.f32 %v559_v34, 0.0  ;;  %v702_v2 = vpack.c.bf16 %v632_v12, %v630_v16  ;;  %v1945_v54 = vor.u32 %v2082_v62, %v1942_v18  ;;  %v3289_v26 = vld [vmem:[#allocation11_spill] sm:$0xff]  ;;  %v2087_v23 = vld [vmem:[%s3238_s4 + $0x24] sm:$0xf0]  ;;  %v1966_v34 = vld [vmem:[%s3238_s4 + $0x38] sm:$0xf0] }
 0x119   :  { %1329 = vmatpush.bf16.msrb.mxu1 %v706_v56  ;;  %v622_v51 = vmax.f32 %v552_v46, 0.0  ;;  %v547_v57 = vadd.f32 %v3282_v43, %v2739_v41  ;;  %v624_v48 = vmax.f32 %v554_v37, 0.0  ;;  %v549_v15 = vadd.f32 %v3286_v59, %v3285_v20  ;;  %v1964_v16 = vld [vmem:[%s3238_s4 + $0x30] sm:$0xf]  ;;  %v2089_v12 = vld [vmem:[%s3238_s4 + $0x34] sm:$0xf0] }
 0x11a   :  { %v615_v9 = vmax.f32 %v455_v5, 0.0  ;;  %1064 = vmatpush.bf16.msrb.mxu2 %v685_v27  ;;  %v700_v32 = vpack.c.bf16 %v628_v38, %v626_v25  ;;  %v544_v30 = vadd.f32 %v3287_v35, %v195_v60  ;;  %v542_v1 = vadd.f32 %v3288_v49, %v190_v3  ;;  %v3291_v60 = vld [vmem:[#allocation7_spill] sm:$0xff]  ;;  %v3292_v3 = vld [vmem:[#allocation8_spill] sm:$0xff]  ;;  %v2094_v59 = vld [vmem:[%s3238_s4 + $0x64] sm:$0xf] }
 0x11b   :  { %1242 = vmatpush.bf16.msrb.mxu0 %v2832_v6  ;;  %v618_v33 = vmax.f32 %v547_v57, 0.0  ;;  %v698_v41 = vpack.c.bf16 %v624_v48, %v622_v51  ;;  %v620_v19 = vmax.f32 %v549_v15, 0.0  ;;  %v1941_v42 = vor.u32 %v2083_v24, %v1940_v0  ;;  %v2085_v5 = vld [vmem:[%s3238_s4 + $0x14] sm:$0xf0]  ;;  %v1972_v46 = vld [vmem:[%s3238_s4 + $0x40] sm:$0xf] }
 0x11c   :  { %1156 = vmatpush.bf16.msrb.mxu3 %v695_v7  ;;  %v693_v58 = vpack.c.bf16 %v615_v9, %v613_v40  ;;  %v616_v56 = vmax.f32 %v544_v30, 0.0  ;;  %v614_v45 = vmax.f32 %v542_v1, 0.0  ;;  %v1953_v13 = vor.u32 %v2084_v21, %v1950_v28  ;;  %v2908_v7 = vpop.permute.xlu0 %748  ;;  %v1990_v15 = vld [vmem:[%s3238_s4 + $0x68] sm:$0xf0]  ;;  %v1988_v49 = vld [vmem:[%s3238_s4 + $0x60] sm:$0xf] }
 0x11d   :  { %1330 = vmatpush.bf16.msrb.mxu1 %v704_v31  ;;  %v696_v36 = vpack.c.bf16 %v620_v19, %v618_v33  ;;  %v1969_v52 = vor.u32 %v2088_v53, %v1966_v34  ;;  %v2916_v9 = vpop.permute.xlu2 %758  ;;  %v2918_v31 = vpop.permute.xlu1 %753  ;;  %v1965_v40 = vor.u32 %v2089_v12, %v1964_v16  ;;  %v1993_v30 = vor.u32 %v2094_v59, %v1990_v15  ;;  %v2095_v1 = vld [vmem:[%s3238_s4 + $0x64] sm:$0xf0]  ;;  %v2096_v24 = vld [vmem:[%s3238_s4 + $0x74] sm:$0xf]  ;;  %v1998_v19 = vld [vmem:[%s3238_s4 + $0x78] sm:$0xf0] }
 0x11e   :  { %1065 = vmatpush.bf16.msrb.mxu2 %v683_v55  ;;  %v694_v4 = vpack.c.bf16 %v616_v56, %v614_v45  ;;  %v2090_v55 = vld [vmem:[%s3238_s4 + $0x44] sm:$0xf]  ;;  %v2014_v16 = vld [vmem:[%s3238_s4 + $0x98] sm:$0xf0] }
 0x11f   :  { %1243 = vmatpush.bf16.msrb.mxu0 %v684_v10 }
 0x120   :  { %1157 = vmatpush.bf16.msrb.mxu3 %v693_v58  ;;  %v2091_v58 = vld [vmem:[%s3238_s4 + $0x44] sm:$0xf0] }
 0x121   :  { %1331 = vmatpush.bf16.msrb.mxu1 %v702_v2  ;;  %v1973_v37 = vor.u32 %v2091_v58, %v1972_v46  ;;  %v2092_v2 = vld [vmem:[%s3238_s4 + $0x54] sm:$0xf] }
 0x122   :  { %1066 = vmatpush.bf16.msrb.mxu2 %v3283_v61  ;;  %v1980_v61 = vld [vmem:[%s3238_s4 + $0x50] sm:$0xf] }
 0x123   :  { %1244 = vmatpush.bf16.msrb.mxu0 %v3284_v17  ;;  %1158 = vmatmul.bf16.vlgmr.msrb.gmra.mxu3 %v1945_v54 }
 0x124   :  { %v2926_v62 = vpop.permute.xlu0 %763 }
 0x125   :  { %1332 = vmatpush.bf16.msrb.mxu1 %v700_v32  ;;  %v2928_v47 = vpop.permute.xlu2 %773  ;;  %v2930_v22 = vpop.permute.xlu1 %768 }
 0x126   :  { %1067 = vmatpush.bf16.msrb.mxu2 %v3289_v26 }
 0x127   :  { %1245 = vmatpush.bf16.msrb.mxu0 %v3290_v39 }
 0x129   :  { %1333 = vmatpush.bf16.msrb.mxu1 %v698_v41  ;;  %v1989_v41 = vor.u32 %v2095_v1, %v1988_v49 }
 0x12a   :  { %1068 = vmatpush.bf16.msrb.mxu2 %v3291_v60 }
 0x12b   :  { %1246 = vmatpush.bf16.msrb.mxu0 %v3292_v3 }
 0x12c   :  { %v2938_v8 = vpop.permute.xlu0 %778 }
 0x12d   :  { %1334 = vmatpush.bf16.msrb.mxu1 %v696_v36  ;;  %1069 = vmatmul.bf16.vlgmr.msrb.gmra.mxu2 %v1941_v42  ;;  %v2940_v25 = vpop.permute.xlu2 %788  ;;  %v2942_v38 = vpop.permute.xlu1 %783  ;;  %v2097_v36 = vld [vmem:[%s3238_s4 + $0x74] sm:$0xf0] }
 0x12e   :  { %2116 = vmatpush.bf16.msra.mxu2 %v2784_v29  ;;  %1247 = vmatmul.bf16.vlgmr.msrb.gmra.mxu0 %v1941_v42  ;;  %v1948_v29 = vld [vmem:[%s3238_s4 + $0x10] sm:$0xf]  ;;  %v2001_v42 = vor.u32 %v2096_v24, %v1998_v19 }
 0x12f   :  { %v1949_v27 = vor.u32 %v2085_v5, %v1948_v29  ;;  %v2006_v29 = vld [vmem:[%s3238_s4 + $0x88] sm:$0xf0] }
 0x131   :  { %1335 = vmatpush.bf16.msrb.mxu1 %v694_v4 }
 0x132   :  { %2117 = vmatpush.bf16.msra.mxu2 %v2802_v14  ;;  %v2086_v14 = vld [vmem:[%s3238_s4 + $0x24] sm:$0xf] }
 0x133   :  { %1163 = vmatmul.bf16.gmra.mxu3 %v1953_v13 }
 0x134   :  { %1336 = vmatmul.bf16.vlgmr.msrb.gmra.mxu1 %v1945_v54  ;;  %v1982_v54 = vld [vmem:[%s3238_s4 + $0x58] sm:$0xf0]  ;;  %v2950_v43 = vpop.permute.xlu0 %793 }
 0x135   :  { %v1985_v51 = vor.u32 %v2092_v2, %v1982_v54  ;;  %v2952_v57 = vpop.permute.xlu2 %803  ;;  %v2954_v48 = vpop.permute.xlu1 %798 }
 0x136   :  { %2118 = vmatpush.bf16.msra.mxu2 %v2819_v63  ;;  %v1958_v63 = vld [vmem:[%s3238_s4 + $0x28] sm:$0xf0] }
 0x137   :  { %v1961_v11 = vor.u32 %v2086_v14, %v1958_v63  ;;  %v2004_v63 = vld [vmem:[%s3238_s4 + $0x80] sm:$0xf] }
 0x13a   :  { %2119 = vmatpush.bf16.msra.mxu2 %v2832_v6  ;;  %v1956_v6 = vld [vmem:[%s3238_s4 + $0x20] sm:$0xf] }
 0x13b   :  { %v1957_v50 = vor.u32 %v2087_v23, %v1956_v6 }
 0x13c   :  { %v2962_v20 = vpop.permute.xlu0 %808 }
 0x13d   :  { %1074 = vmatmul.bf16.gmra.mxu2 %v1949_v27  ;;  %v2970_v33 = vpop.permute.xlu2 %818  ;;  %v2972_v35 = vpop.permute.xlu1 %813 }
 0x13e   :  { %2120 = vmatpush.bf16.msra.mxu2 %v684_v10  ;;  %1252 = vmatmul.bf16.gmra.mxu0 %v1949_v27  ;;  %v1974_v10 = vld [vmem:[%s3238_s4 + $0x48] sm:$0xf0] }
 0x13f   :  { %v1977_v18 = vor.u32 %v2090_v55, %v1974_v10 }
 0x142   :  { %2121 = vmatpush.bf16.msra.mxu2 %v3284_v17  ;;  %v2093_v17 = vld [vmem:[%s3238_s4 + $0x54] sm:$0xf0] }
 0x143   :  { %1168 = vmatmul.bf16.gmra.mxu3 %v1961_v11  ;;  %v1981_v32 = vor.u32 %v2093_v17, %v1980_v61  ;;  %v2012_v17 = vld [vmem:[%s3238_s4 + $0x90] sm:$0xf] }
 0x144   :  { %1341 = vmatmul.bf16.gmra.mxu1 %v1953_v13  ;;  %v2980_v26 = vpop.permute.xlu0 %823  ;;  %v2098_v13 = vld [vmem:[%s3238_s4 + $0x84] sm:$0xf] }
 0x145   :  { %v2984_v0 = vpop.permute.xlu1 %828  ;;  %v2009_v27 = vor.u32 %v2098_v13, %v2006_v29 }
 0x146   :  { %2122 = vmatpush.bf16.msra.mxu2 %v3290_v39  ;;  %v2982_v39 = vpop.permute.xlu2 %833 }
 0x14a   :  { %2123 = vmatpush.bf16.msra.mxu2 %v3292_v3  ;;  %v1996_v3 = vld [vmem:[%s3238_s4 + $0x70] sm:$0xf] }
 0x14b   :  { %v1997_v21 = vor.u32 %v2097_v36, %v1996_v3 }
 0x14c   :  { %v2992_v56 = vpop.permute.xlu0 %838 }
 0x14d   :  { %1079 = vmatmul.bf16.gmra.mxu2 %v1957_v50  ;;  %v2996_v60 = vpop.permute.xlu1 %843 }
 0x14e   :  { %1257 = vmatmul.bf16.gmra.mxu0 %v1957_v50  ;;  %v2994_v45 = vpop.permute.xlu2 %848 }
 0x153   :  { %1173 = vmatmul.bf16.gmra.mxu3 %v1969_v52 }
 0x154   :  { %1346 = vmatmul.bf16.gmra.mxu1 %v1961_v11  ;;  %v3004_v28 = vpop.permute.xlu0 %853  ;;  %v2099_v11 = vld [vmem:[%s3238_s4 + $0x84] sm:$0xf0] }
 0x155   :  { %v3014_v5 = vpop.permute.xlu1 %858  ;;  %v2005_v53 = vor.u32 %v2099_v11, %v2004_v63 }
 0x156   :  { %v3006_v4 = vpop.permute.xlu2 %863 }
 0x15c   :  { %v3016_v14 = vpop.permute.xlu0 %868 }
 0x15d   :  { %1084 = vmatmul.bf16.gmra.mxu2 %v1965_v40  ;;  %v3026_v50 = vpop.permute.xlu1 %873 }
 0x15e   :  { %1262 = vmatmul.bf16.gmra.mxu0 %v1965_v40  ;;  %v3024_v23 = vpop.permute.xlu2 %878 }
 0x163   :  { %1178 = vmatmul.bf16.gmra.mxu3 %v1977_v18 }
 0x164   :  { %1351 = vmatmul.bf16.gmra.mxu1 %v1969_v52  ;;  %v2100_v52 = vld [vmem:[%s3238_s4 + $0x94] sm:$0xf]  ;;  %v3034_v40 = vpop.permute.xlu0 %883 }
 0x165   :  { %v2017_v46 = vor.u32 %v2100_v52, %v2014_v16  ;;  %v3040_v54 = vpop.permute.xlu1 %888 }
 0x166   :  { %v3037_v58 = vpop.permute.xlu2 %893 }
 0x16c   :  { %v3050_v19 = vpop.permute.xlu0 %898 }
 0x16d   :  { %1089 = vmatmul.bf16.gmra.mxu2 %v1973_v37  ;;  %v1516_v29 = vpop.permute.xlu1 %1515 }
 0x16e   :  { %1267 = vmatmul.bf16.gmra.mxu0 %v1973_v37  ;;  %v1521_v13 = vpop.permute.xlu2 %1520 }
 0x173   :  { %1183 = vmatmul.bf16.gmra.mxu3 %v1985_v51 }
 0x174   :  { %1356 = vmatmul.bf16.gmra.mxu1 %v1977_v18 }
 0x17d   :  { %1094 = vmatmul.bf16.gmra.mxu2 %v1981_v32 }
 0x17e   :  { %1272 = vmatmul.bf16.gmra.mxu0 %v1981_v32  ;;  %v2101_v32 = vld [vmem:[%s3238_s4 + $0x94] sm:$0xf0] }
 0x17f   :  { %v2013_v24 = vor.u32 %v2101_v32, %v2012_v17 }
 0x183   :  { %1188 = vmatmul.bf16.gmra.mxu3 %v1993_v30 }
 0x184   :  { %1361 = vmatmul.bf16.gmra.mxu1 %v1985_v51 }
 0x18d   :  { %1099 = vmatmul.bf16.gmra.mxu2 %v1989_v41 }
 0x18e   :  { %1277 = vmatmul.bf16.gmra.mxu0 %v1989_v41 }
 0x193   :  { %1193 = vmatmul.bf16.gmra.mxu3 %v2001_v42 }
 0x194   :  { %1366 = vmatmul.bf16.gmra.mxu1 %v1993_v30 }
 0x19d   :  { %1104 = vmatmul.bf16.gmra.mxu2 %v1997_v21 }
 0x19e   :  { %1282 = vmatmul.bf16.gmra.mxu0 %v1997_v21 }
 0x1a3   :  { %1198 = vmatmul.bf16.gmra.mxu3 %v2009_v27 }
 0x1a4   :  { %1371 = vmatmul.bf16.gmra.mxu1 %v2001_v42 }
 0x1a6   :  { %v1159_v6 = vpop.f32.mrf.mxu3 }
 0x1ab   :  { %v1248_v34 = vpop.f32.mrf.mxu0 }
 0x1ac   :  { %v1249_v55 = vadd.f32 %v1248_v34, %v2900_v44 }
 0x1ad   :  { %1109 = vmatmul.bf16.gmra.mxu2 %v2005_v53 }
 0x1ae   :  { %1287 = vmatmul.bf16.gmra.mxu0 %v2005_v53  ;;  %v1161_v12 = vpop.f32.mrf.mxu3 }
 0x1b0   :  { %v1070_v10 = vpop.f32.mrf.mxu2 }
 0x1b1   :  { %v1337_v18 = vpop.f32.mrf.mxu1  ;;  %v1071_v37 = vadd.f32 %v1070_v10, %v2900_v44 }
 0x1b2   :  { %v1338_v2 = vadd.f32 %v1337_v18, %v1249_v55 }
 0x1b3   :  { %v1250_v51 = vpop.f32.mrf.mxu0  ;;  %v1160_v61 = vadd.f32 %v1159_v6, %v1071_v37  ;;  %1203 = vmatmul.bf16.gmra.mxu3 %v2017_v46  ;;  %v2102_v6 = vld [vmem:[%s3238_s4 + $0xa4] sm:$0xf] }
 0x1b4   :  { %1376 = vmatmul.bf16.gmra.mxu1 %v2009_v27  ;;  %v1251_v59 = vadd.f32 %v1250_v51, %v2908_v7  ;;  %v1418_v49 = vmax.f32 %v1338_v2, 0.0 }
 0x1b5   :  { %v1417_v3 = vmax.f32 %v1160_v61, 0.0 }
 0x1b6   :  { %v1164_v15 = vpop.f32.mrf.mxu3  ;;  %v1674_v27 = vmul.f32 %v1516_v29, %v1418_v49  ;;  %v2020_v49 = vld [vmem:[%s3238_s4 + $0xa0] sm:$0xf] }
 0x1b7   :  { %v1673_v53 = vmul.f32 %v1516_v29, %v1417_v3 }
 0x1b8   :  { %v1072_v30 = vpop.f32.mrf.mxu2 }
 0x1b9   :  { %v1339_v44 = vpop.f32.mrf.mxu1  ;;  %v1073_v1 = vadd.f32 %v1072_v30, %v2908_v7  ;;  %v2022_v7 = vld [vmem:[%s3238_s4 + $0xa8] sm:$0xf0] }
 0x1ba   :  { %v1340_v41 = vadd.f32 %v1339_v44, %v1251_v59  ;;  %v2025_v18 = vor.u32 %v2102_v6, %v2022_v7  ;;  %v1526_v59 = vpop.permute.xlu0 %1525 }
 0x1bb   :  { %v1253_v42 = vpop.f32.mrf.mxu0  ;;  %v1162_v21 = vadd.f32 %v1161_v12, %v1073_v1  ;;  %v2103_v1 = vld [vmem:[%s3238_s4 + $0xa4] sm:$0xf0] }
 0x1bc   :  { %v1420_v36 = vmax.f32 %v1340_v41, 0.0  ;;  %v1254_v16 = vadd.f32 %v1253_v42, %v2918_v31 }
 0x1bd   :  { %v1419_v11 = vmax.f32 %v1162_v21, 0.0  ;;  %1114 = vmatmul.bf16.gmra.mxu2 %v2013_v24 }
 0x1be   :  { %v1676_v63 = vmul.f32 %v1521_v13, %v1420_v36  ;;  %1292 = vmatmul.bf16.gmra.mxu0 %v2013_v24  ;;  %v1166_v12 = vpop.f32.mrf.mxu3 }
 0x1bf   :  { %v1675_v52 = vmul.f32 %v1521_v13, %v1419_v11  ;;  %v2021_v13 = vor.u32 %v2103_v1, %v2020_v49  ;;  %v1531_v11 = vpop.permute.xlu1 %1530  ;;  %v2028_v1 = vld [vmem:[%s3238_s4 + $0xb0] sm:$0xf] }
 0x1c0   :  { %v1774_v34 = vadd.f32 %v1676_v63, %v1674_v27  ;;  %v1075_v55 = vpop.f32.mrf.mxu2 }
 0x1c1   :  { %v1342_v10 = vpop.f32.mrf.mxu1  ;;  %v1737_v37 = vadd.f32 %v1675_v52, %v1673_v53  ;;  %v1076_v2 = vadd.f32 %v1075_v55, %v2918_v31  ;;  %v2104_v53 = vld [vmem:[%s3238_s4 + $0xb4] sm:$0xf] }
 0x1c2   :  { %v1343_v51 = vadd.f32 %v1342_v10, %v1254_v16 }
 0x1c3   :  { %v1255_v61 = vpop.f32.mrf.mxu0  ;;  %v1165_v32 = vadd.f32 %v1164_v15, %v1076_v2  ;;  %1208 = vmatmul.bf16.gmra.mxu3 %v2025_v18 }
 0x1c4   :  { %v1422_v17 = vmax.f32 %v1343_v51, 0.0  ;;  %1381 = vmatmul.bf16.gmra.mxu1 %v2017_v46  ;;  %v1256_v31 = vadd.f32 %v1255_v61, %v2916_v9 }
 0x1c5   :  { %v1421_v44 = vmax.f32 %v1165_v32, 0.0 }
 0x1c6   :  { %v1678_v30 = vmul.f32 %v1526_v59, %v1422_v17  ;;  %v1169_v42 = vpop.f32.mrf.mxu3 }
 0x1c7   :  { %v1677_v24 = vmul.f32 %v1526_v59, %v1421_v44 }
 0x1c8   :  { %v1775_v41 = vadd.f32 %v1774_v34, %v1678_v30  ;;  %v1077_v3 = vpop.f32.mrf.mxu2  ;;  %v2030_v34 = vld [vmem:[%s3238_s4 + $0xb8] sm:$0xf0]  ;;  %v1536_v30 = vpop.permute.xlu2 %1535 }
 0x1c9   :  { %v1344_v15 = vpop.f32.mrf.mxu1  ;;  %v1738_v46 = vadd.f32 %v1737_v37, %v1677_v24  ;;  %v1078_v36 = vadd.f32 %v1077_v3, %v2916_v9  ;;  %v2033_v37 = vor.u32 %v2104_v53, %v2030_v34  ;;  %v2038_v53 = vld [vmem:[%s3238_s4 + $0xc8] sm:$0xf0] }
 0x1ca   :  { %v1345_v21 = vadd.f32 %v1344_v15, %v1256_v31 }
 0x1cb   :  { %v1258_v29 = vpop.f32.mrf.mxu0  ;;  %v1167_v63 = vadd.f32 %v1166_v12, %v1078_v36 }
 0x1cc   :  { %v1424_v27 = vmax.f32 %v1345_v21, 0.0  ;;  %v1259_v16 = vadd.f32 %v1258_v29, %v2926_v62 }
 0x1cd   :  { %v1423_v7 = vmax.f32 %v1167_v63, 0.0  ;;  %1119 = vmatmul.bf16.gmra.mxu2 %v2021_v13  ;;  %v1541_v63 = vpop.permute.xlu0 %1540 }
 0x1ce   :  { %v1680_v6 = vmul.f32 %v1531_v11, %v1424_v27  ;;  %1297 = vmatmul.bf16.gmra.mxu0 %v2021_v13  ;;  %v1171_v55 = vpop.f32.mrf.mxu3 }
 0x1cf   :  { %v1679_v9 = vmul.f32 %v1531_v11, %v1423_v7  ;;  %v2106_v7 = vld [vmem:[%s3238_s4 + $0xc4] sm:$0xf] }
 0x1d0   :  { %v1776_v52 = vadd.f32 %v1775_v41, %v1680_v6  ;;  %v1080_v10 = vpop.f32.mrf.mxu2  ;;  %v2105_v41 = vld [vmem:[%s3238_s4 + $0xb4] sm:$0xf0] }
 0x1d1   :  { %v1347_v12 = vpop.f32.mrf.mxu1  ;;  %v1739_v2 = vadd.f32 %v1738_v46, %v1679_v9  ;;  %v1081_v51 = vadd.f32 %v1080_v10, %v2926_v62  ;;  %v2029_v21 = vor.u32 %v2105_v41, %v2028_v1  ;;  %v2041_v10 = vor.u32 %v2106_v7, %v2038_v53  ;;  %v2107_v1 = vld [vmem:[%s3238_s4 + $0xc4] sm:$0xf0] }
 0x1d2   :  { %v1348_v61 = vadd.f32 %v1347_v12, %v1259_v16 }
 0x1d3   :  { %v1260_v17 = vpop.f32.mrf.mxu0  ;;  %v1170_v59 = vadd.f32 %v1169_v42, %v1081_v51  ;;  %1213 = vmatmul.bf16.gmra.mxu3 %v2033_v37 }
 0x1d4   :  { %v1426_v32 = vmax.f32 %v1348_v61, 0.0  ;;  %1386 = vmatmul.bf16.gmra.mxu1 %v2025_v18  ;;  %v1261_v62 = vadd.f32 %v1260_v17, %v2930_v22 }
 0x1d5   :  { %v1425_v49 = vmax.f32 %v1170_v59, 0.0  ;;  %v1546_v59 = vpop.permute.xlu1 %1545 }
 0x1d6   :  { %v1682_v44 = vmul.f32 %v1536_v30, %v1426_v32  ;;  %v1174_v3 = vpop.f32.mrf.mxu3 }
 0x1d7   :  { %v1681_v31 = vmul.f32 %v1536_v30, %v1425_v49  ;;  %v2036_v49 = vld [vmem:[%s3238_s4 + $0xc0] sm:$0xf] }
 0x1d8   :  { %v1777_v24 = vadd.f32 %v1776_v52, %v1682_v44  ;;  %v1082_v15 = vpop.f32.mrf.mxu2 }
 0x1d9   :  { %v1349_v42 = vpop.f32.mrf.mxu1  ;;  %v1740_v18 = vadd.f32 %v1739_v2, %v1681_v31  ;;  %v1083_v46 = vadd.f32 %v1082_v15, %v2930_v22 }
 0x1da   :  { %v1350_v36 = vadd.f32 %v1349_v42, %v1261_v62 }
 0x1db   :  { %v1263_v13 = vpop.f32.mrf.mxu0  ;;  %v1172_v27 = vadd.f32 %v1171_v55, %v1083_v46 }
 0x1dc   :  { %v1428_v29 = vmax.f32 %v1350_v36, 0.0  ;;  %v1264_v52 = vadd.f32 %v1263_v13, %v2928_v47  ;;  %v1551_v13 = vpop.permute.xlu2 %1550 }
 0x1dd   :  { %v1427_v6 = vmax.f32 %v1172_v27, 0.0  ;;  %1124 = vmatmul.bf16.gmra.mxu2 %v2029_v21 }
 0x1de   :  { %v1684_v11 = vmul.f32 %v1541_v63, %v1428_v29  ;;  %1302 = vmatmul.bf16.gmra.mxu0 %v2029_v21  ;;  %v1176_v9 = vpop.f32.mrf.mxu3 }
 0x1df   :  { %v1683_v22 = vmul.f32 %v1541_v63, %v1427_v6  ;;  %v2108_v63 = vld [vmem:[%s3238_s4 + $0xd4] sm:$0xf] }
 0x1e0   :  { %v1778_v34 = vadd.f32 %v1777_v24, %v1684_v11  ;;  %v1085_v16 = vpop.f32.mrf.mxu2  ;;  %v2046_v11 = vld [vmem:[%s3238_s4 + $0xd8] sm:$0xf0] }
 0x1e1   :  { %v1352_v55 = vpop.f32.mrf.mxu1  ;;  %v1741_v12 = vadd.f32 %v1740_v18, %v1683_v22  ;;  %v1086_v2 = vadd.f32 %v1085_v16, %v2928_v47  ;;  %v2037_v18 = vor.u32 %v2107_v1, %v2036_v49 }
 0x1e2   :  { %v1353_v51 = vadd.f32 %v1352_v55, %v1264_v52  ;;  %v2049_v52 = vor.u32 %v2108_v63, %v2046_v11 }
 0x1e3   :  { %v1265_v61 = vpop.f32.mrf.mxu0  ;;  %v1175_v32 = vadd.f32 %v1174_v3, %v1086_v2  ;;  %1218 = vmatmul.bf16.gmra.mxu3 %v2041_v10 }
 0x1e4   :  { %v1430_v17 = vmax.f32 %v1353_v51, 0.0  ;;  %1391 = vmatmul.bf16.gmra.mxu1 %v2033_v37  ;;  %v1266_v47 = vadd.f32 %v1265_v61, %v2938_v8  ;;  %v1556_v61 = vpop.permute.xlu0 %1555 }
 0x1e5   :  { %v1429_v44 = vmax.f32 %v1175_v32, 0.0 }
 0x1e6   :  { %v1686_v30 = vmul.f32 %v1546_v59, %v1430_v17  ;;  %v1179_v31 = vpop.f32.mrf.mxu3 }
 0x1e7   :  { %v1685_v24 = vmul.f32 %v1546_v59, %v1429_v44  ;;  %v2044_v59 = vld [vmem:[%s3238_s4 + $0xd0] sm:$0xf] }
 0x1e8   :  { %v1779_v41 = vadd.f32 %v1778_v34, %v1686_v30  ;;  %v1087_v62 = vpop.f32.mrf.mxu2  ;;  %v2109_v30 = vld [vmem:[%s3238_s4 + $0xd4] sm:$0xf0] }
 0x1e9   :  { %v1354_v3 = vpop.f32.mrf.mxu1  ;;  %v1742_v37 = vadd.f32 %v1741_v12, %v1685_v24  ;;  %v1088_v15 = vadd.f32 %v1087_v62, %v2938_v8  ;;  %v2045_v62 = vor.u32 %v2109_v30, %v2044_v59 }
 0x1ea   :  { %v1355_v42 = vadd.f32 %v1354_v3, %v1266_v47 }
 0x1eb   :  { %v1268_v46 = vpop.f32.mrf.mxu0  ;;  %v1177_v21 = vadd.f32 %v1176_v9, %v1088_v15 }
 0x1ec   :  { %v1432_v36 = vmax.f32 %v1355_v42, 0.0  ;;  %v1269_v7 = vadd.f32 %v1268_v46, %v2942_v38  ;;  %v1561_v42 = vpop.permute.xlu1 %1560 }
 0x1ed   :  { %v1431_v27 = vmax.f32 %v1177_v21, 0.0  ;;  %1129 = vmatmul.bf16.gmra.mxu2 %v2037_v18  ;;  %v2054_v21 = vld [vmem:[%s3238_s4 + $0xe8] sm:$0xf0] }
 0x1ee   :  { %v1688_v29 = vmul.f32 %v1551_v13, %v1432_v36  ;;  %1307 = vmatmul.bf16.gmra.mxu0 %v2037_v18  ;;  %v1181_v53 = vpop.f32.mrf.mxu3  ;;  %v2110_v36 = vld [vmem:[%s3238_s4 + $0xe4] sm:$0xf] }
 0x1ef   :  { %v1687_v8 = vmul.f32 %v1551_v13, %v1431_v27 }
 0x1f0   :  { %v1780_v6 = vadd.f32 %v1779_v41, %v1688_v29  ;;  %v1090_v34 = vpop.f32.mrf.mxu2 }
 0x1f1   :  { %v1357_v22 = vpop.f32.mrf.mxu1  ;;  %v1743_v9 = vadd.f32 %v1742_v37, %v1687_v8  ;;  %v1091_v16 = vadd.f32 %v1090_v34, %v2942_v38 }
 0x1f2   :  { %v1358_v55 = vadd.f32 %v1357_v22, %v1269_v7 }
 0x1f3   :  { %v1270_v12 = vpop.f32.mrf.mxu0  ;;  %v1180_v51 = vadd.f32 %v1179_v31, %v1091_v16  ;;  %1223 = vmatmul.bf16.gmra.mxu3 %v2049_v52  ;;  %v1566_v16 = vpop.permute.xlu2 %1565 }
 0x1f4   :  { %v1434_v2 = vmax.f32 %v1358_v55, 0.0  ;;  %1396 = vmatmul.bf16.gmra.mxu1 %v2041_v10  ;;  %v1271_v38 = vadd.f32 %v1270_v12, %v2940_v25 }
 0x1f5   :  { %v1433_v32 = vmax.f32 %v1180_v51, 0.0  ;;  %v2111_v51 = vld [vmem:[%s3238_s4 + $0xe4] sm:$0xf0] }
 0x1f6   :  { %v1690_v17 = vmul.f32 %v1556_v61, %v1434_v2  ;;  %v1184_v1 = vpop.f32.mrf.mxu3  ;;  %v2052_v2 = vld [vmem:[%s3238_s4 + $0xe0] sm:$0xf] }
 0x1f7   :  { %v1689_v49 = vmul.f32 %v1556_v61, %v1433_v32 }
 0x1f8   :  { %v1781_v44 = vadd.f32 %v1780_v6, %v1690_v17  ;;  %v1092_v41 = vpop.f32.mrf.mxu2  ;;  %v2057_v6 = vor.u32 %v2110_v36, %v2054_v21 }
 0x1f9   :  { %v1359_v24 = vpop.f32.mrf.mxu1  ;;  %v1744_v10 = vadd.f32 %v1743_v9, %v1689_v49  ;;  %v1093_v47 = vadd.f32 %v1092_v41, %v2940_v25 }
 0x1fa   :  { %v1360_v31 = vadd.f32 %v1359_v24, %v1271_v38  ;;  %v2053_v38 = vor.u32 %v2111_v51, %v2052_v2 }
 0x1fb   :  { %v1273_v3 = vpop.f32.mrf.mxu0  ;;  %v1182_v15 = vadd.f32 %v1181_v53, %v1093_v47 }
 0x1fc   :  { %v1436_v37 = vmax.f32 %v1360_v31, 0.0  ;;  %v1274_v29 = vadd.f32 %v1273_v3, %v2950_v43  ;;  %v2062_v3 = vld [vmem:[%s3238_s4 + $0xf8] sm:$0xf0] }
 0x1fd   :  { %v1435_v46 = vmax.f32 %v1182_v15, 0.0  ;;  %1134 = vmatmul.bf16.gmra.mxu2 %v2045_v62 }
 0x1fe   :  { %v1692_v18 = vmul.f32 %v1561_v42, %v1436_v37  ;;  %1312 = vmatmul.bf16.gmra.mxu0 %v2045_v62  ;;  %v1186_v27 = vpop.f32.mrf.mxu3  ;;  %v2112_v62 = vld [vmem:[%s3238_s4 + $0xf4] sm:$0xf] }
 0x1ff   :  { %v1691_v25 = vmul.f32 %v1561_v42, %v1435_v46  ;;  %v2065_v36 = vor.u32 %v2112_v62, %v2062_v3 }
 0x200   :  { %v1782_v13 = vadd.f32 %v1781_v44, %v1692_v18  ;;  %v1095_v63 = vpop.f32.mrf.mxu2 }
 0x201   :  { %v1362_v11 = vpop.f32.mrf.mxu1  ;;  %v1745_v8 = vadd.f32 %v1744_v10, %v1691_v25  ;;  %v1096_v7 = vadd.f32 %v1095_v63, %v2950_v43  ;;  %v1571_v10 = vpop.permute.xlu0 %1570 }
 0x202   :  { %v1363_v53 = vadd.f32 %v1362_v11, %v1274_v29  ;;  %v1576_v11 = vpop.permute.xlu1 %1575 }
 0x203   :  { %v1275_v34 = vpop.f32.mrf.mxu0  ;;  %v1185_v9 = vadd.f32 %v1184_v1, %v1096_v7  ;;  %1228 = vmatmul.bf16.gmra.mxu3 %v2057_v6 }
 0x204   :  { %v1438_v22 = vmax.f32 %v1363_v53, 0.0  ;;  %1401 = vmatmul.bf16.gmra.mxu1 %v2049_v52  ;;  %v1276_v43 = vadd.f32 %v1275_v34, %v2954_v48  ;;  %v2060_v53 = vld [vmem:[%s3238_s4 + $0xf0] sm:$0xf]  ;;  %v2113_v34 = vld [vmem:[%s3238_s4 + $0xf4] sm:$0xf0] }
 0x205   :  { %v1437_v12 = vmax.f32 %v1185_v9, 0.0 }
 0x206   :  { %v1694_v55 = vmul.f32 %v1566_v16, %v1438_v22  ;;  %v1189_v32 = vpop.f32.mrf.mxu3 }
 0x207   :  { %v1693_v17 = vmul.f32 %v1566_v16, %v1437_v12 }
 0x208   :  { %v1783_v61 = vadd.f32 %v1782_v13, %v1694_v55  ;;  %v1097_v59 = vpop.f32.mrf.mxu2 }
 0x209   :  { %v1364_v30 = vpop.f32.mrf.mxu1  ;;  %v1746_v52 = vadd.f32 %v1745_v8, %v1693_v17  ;;  %v1098_v44 = vadd.f32 %v1097_v59, %v2954_v48  ;;  %v1581_v59 = vpop.permute.xlu2 %1580 }
 0x20a   :  { %v1365_v49 = vadd.f32 %v1364_v30, %v1276_v43 }
 0x20b   :  { %v1278_v1 = vpop.f32.mrf.mxu0  ;;  %v1187_v24 = vadd.f32 %v1186_v27, %v1098_v44 }
 0x20c   :  { %v1440_v41 = vmax.f32 %v1365_v49, 0.0  ;;  %v1279_v15 = vadd.f32 %v1278_v1, %v2952_v57 }
 0x20d   :  { %v1439_v31 = vmax.f32 %v1187_v24, 0.0  ;;  %1139 = vmatmul.bf16.gmra.mxu2 %v2053_v38 }
 0x20e   :  { %v1696_v47 = vmul.f32 %v1571_v10, %v1440_v41  ;;  %1317 = vmatmul.bf16.gmra.mxu0 %v2053_v38  ;;  %v1191_v42 = vpop.f32.mrf.mxu3 }
 0x20f   :  { %v1695_v48 = vmul.f32 %v1571_v10, %v1439_v31 }
 0x210   :  { %v1784_v37 = vadd.f32 %v1783_v61, %v1696_v47  ;;  %v1100_v18 = vpop.f32.mrf.mxu2  ;;  %v2061_v61 = vor.u32 %v2113_v34, %v2060_v53 }
 0x211   :  { %v1367_v46 = vpop.f32.mrf.mxu1  ;;  %v1747_v21 = vadd.f32 %v1746_v52, %v1695_v48  ;;  %v1101_v13 = vadd.f32 %v1100_v18, %v2952_v57 }
 0x212   :  { %v1368_v25 = vadd.f32 %v1367_v46, %v1279_v15 }
 0x213   :  { %v1280_v29 = vpop.f32.mrf.mxu0  ;;  %v1190_v63 = vadd.f32 %v1189_v32, %v1101_v13  ;;  %1233 = vmatmul.bf16.gmra.mxu3 %v2065_v36 }
 0x214   :  { %v1442_v27 = vmax.f32 %v1368_v25, 0.0  ;;  %1406 = vmatmul.bf16.gmra.mxu1 %v2057_v6  ;;  %v1281_v57 = vadd.f32 %v1280_v29, %v2962_v20 }
 0x215   :  { %v1441_v7 = vmax.f32 %v1190_v63, 0.0 }
 0x216   :  { %v1698_v8 = vmul.f32 %v1576_v11, %v1442_v27  ;;  %v1194_v16 = vpop.f32.mrf.mxu3 }
 0x217   :  { %v1697_v9 = vmul.f32 %v1576_v11, %v1441_v7  ;;  %v1591_v7 = vpop.permute.xlu1 %1590 }
 0x218   :  { %v1785_v22 = vadd.f32 %v1784_v37, %v1698_v8  ;;  %v1102_v55 = vpop.f32.mrf.mxu2  ;;  %v1586_v37 = vpop.permute.xlu0 %1585 }
 0x219   :  { %v1369_v12 = vpop.f32.mrf.mxu1  ;;  %v1748_v6 = vadd.f32 %v1747_v21, %v1697_v9  ;;  %v1103_v2 = vadd.f32 %v1102_v55, %v2962_v20 }
 0x21a   :  { %v1370_v51 = vadd.f32 %v1369_v12, %v1281_v57 }
 0x21b   :  { %v1283_v17 = vpop.f32.mrf.mxu0  ;;  %v1192_v32 = vadd.f32 %v1191_v42, %v1103_v2 }
 0x21c   :  { %v1444_v43 = vmax.f32 %v1370_v51, 0.0  ;;  %v1284_v38 = vadd.f32 %v1283_v17, %v2972_v35 }
 0x21d   :  { %v1443_v52 = vmax.f32 %v1192_v32, 0.0  ;;  %1144 = vmatmul.bf16.gmra.mxu2 %v2061_v61 }
 0x21e   :  { %v1700_v30 = vmul.f32 %v1581_v59, %v1444_v43  ;;  %v1196_v1 = vpop.f32.mrf.mxu3  ;;  %v1596_v43 = vpop.permute.xlu2 %1595 }
 0x21f   :  { %v1699_v49 = vmul.f32 %v1581_v59, %v1443_v52 }
 0x220   :  { %v1786_v44 = vadd.f32 %v1785_v22, %v1700_v30  ;;  %v1105_v41 = vpop.f32.mrf.mxu2 }
 0x221   :  { %v1372_v24 = vpop.f32.mrf.mxu1  ;;  %v1749_v10 = vadd.f32 %v1748_v6, %v1699_v49  ;;  %v1106_v47 = vadd.f32 %v1105_v41, %v2972_v35 }
 0x222   :  { %v1373_v20 = vadd.f32 %v1372_v24, %v1284_v38 }
 0x223   :  { %v1285_v31 = vpop.f32.mrf.mxu0  ;;  %v1195_v3 = vadd.f32 %v1194_v16, %v1106_v47 }
 0x224   :  { %v1446_v62 = vmax.f32 %v1373_v20, 0.0  ;;  %1411 = vmatmul.bf16.gmra.mxu1 %v2065_v36  ;;  %v1286_v46 = vadd.f32 %v1285_v31, %v2970_v33  ;;  %v1601_v20 = vpop.permute.xlu0 %1600 }
 0x225   :  { %v1445_v15 = vmax.f32 %v1195_v3, 0.0 }
 0x226   :  { %v1702_v48 = vmul.f32 %v1586_v37, %v1446_v62  ;;  %v1199_v21 = vpop.f32.mrf.mxu3 }
 0x227   :  { %v1701_v18 = vmul.f32 %v1586_v37, %v1445_v15 }
 0x228   :  { %v1787_v42 = vadd.f32 %v1786_v44, %v1702_v48  ;;  %v1107_v13 = vpop.f32.mrf.mxu2 }
 0x229   :  { %v1374_v25 = vpop.f32.mrf.mxu1  ;;  %v1750_v29 = vadd.f32 %v1749_v10, %v1701_v18  ;;  %v1108_v27 = vadd.f32 %v1107_v13, %v2970_v33 }
 0x22a   :  { %v1375_v63 = vadd.f32 %v1374_v25, %v1286_v46 }
 0x22b   :  { %v1288_v35 = vpop.f32.mrf.mxu0  ;;  %v1197_v8 = vadd.f32 %v1196_v1, %v1108_v27  ;;  %v1606_v27 = vpop.permute.xlu1 %1605 }
 0x22c   :  { %v1448_v11 = vmax.f32 %v1375_v63, 0.0  ;;  %v1289_v9 = vadd.f32 %v1288_v35, %v2980_v26 }
 0x22d   :  { %v1447_v36 = vmax.f32 %v1197_v8, 0.0  ;;  %1322 = vmatmul.bf16.vlgmr.msra.gmra.mxu2 %v2061_v61 }
 0x22e   :  { %v1704_v53 = vmul.f32 %v1591_v7, %v1448_v11  ;;  %v1201_v57 = vpop.f32.mrf.mxu3 }
 0x22f   :  { %v1703_v22 = vmul.f32 %v1591_v7, %v1447_v36 }
 0x230   :  { %v1788_v34 = vadd.f32 %v1787_v42, %v1704_v53  ;;  %v1110_v16 = vpop.f32.mrf.mxu2 }
 0x231   :  { %v1377_v55 = vpop.f32.mrf.mxu1  ;;  %v1751_v12 = vadd.f32 %v1750_v29, %v1703_v22  ;;  %v1111_v6 = vadd.f32 %v1110_v16, %v2980_v26 }
 0x232   :  { %v1378_v2 = vadd.f32 %v1377_v55, %v1289_v9  ;;  %v1611_v55 = vpop.permute.xlu2 %1610 }
 0x233   :  { %v1290_v33 = vpop.f32.mrf.mxu0  ;;  %v1200_v17 = vadd.f32 %v1199_v21, %v1111_v6 }
 0x234   :  { %v1450_v51 = vmax.f32 %v1378_v2, 0.0  ;;  %v1291_v61 = vadd.f32 %v1290_v33, %v2984_v0 }
 0x235   :  { %v1449_v59 = vmax.f32 %v1200_v17, 0.0 }
 0x236   :  { %v1706_v32 = vmul.f32 %v1596_v43, %v1450_v51  ;;  %v1204_v44 = vpop.f32.mrf.mxu3 }
 0x237   :  { %v1705_v52 = vmul.f32 %v1596_v43, %v1449_v59 }
 0x238   :  { %v1789_v30 = vadd.f32 %v1788_v34, %v1706_v32  ;;  %v1112_v49 = vpop.f32.mrf.mxu2 }
 0x239   :  { %v1379_v38 = vpop.f32.mrf.mxu1  ;;  %v1752_v1 = vadd.f32 %v1751_v12, %v1705_v52  ;;  %v1113_v41 = vadd.f32 %v1112_v49, %v2984_v0  ;;  %v1616_v49 = vpop.permute.xlu0 %1615 }
 0x23a   :  { %v1380_v24 = vadd.f32 %v1379_v38, %v1291_v61 }
 0x23b   :  { %v1293_v10 = vpop.f32.mrf.mxu0  ;;  %v1202_v47 = vadd.f32 %v1201_v57, %v1113_v41 }
 0x23c   :  { %v1452_v26 = vmax.f32 %v1380_v24, 0.0  ;;  %v1294_v48 = vadd.f32 %v1293_v10, %v2982_v39 }
 0x23d   :  { %v1451_v62 = vmax.f32 %v1202_v47, 0.0 }
 0x23e   :  { %v1708_v31 = vmul.f32 %v1601_v20, %v1452_v26  ;;  %v1206_v15 = vpop.f32.mrf.mxu3 }
 0x23f   :  { %v1707_v37 = vmul.f32 %v1601_v20, %v1451_v62 }
 0x240   :  { %v1790_v3 = vadd.f32 %v1789_v30, %v1708_v31  ;;  %v1115_v42 = vpop.f32.mrf.mxu2 }
 0x241   :  { %v1382_v18 = vpop.f32.mrf.mxu1  ;;  %v1753_v46 = vadd.f32 %v1752_v1, %v1707_v37  ;;  %v1116_v21 = vadd.f32 %v1115_v42, %v2982_v39 }
 0x242   :  { %v1383_v13 = vadd.f32 %v1382_v18, %v1294_v48  ;;  %v3165_v48 = vpop.permute.xlu1 %1620 }
 0x243   :  { %v1295_v25 = vpop.f32.mrf.mxu0  ;;  %v1205_v29 = vadd.f32 %v1204_v44, %v1116_v21 }
 0x244   :  { %v1454_v0 = vmax.f32 %v1383_v13, 0.0  ;;  %v1296_v7 = vadd.f32 %v1295_v25, %v2992_v56 }
 0x245   :  { %v1453_v35 = vmax.f32 %v1205_v29, 0.0 }
 0x246   :  { %v1710_v63 = vmul.f32 %v1606_v27, %v1454_v0  ;;  %v1209_v53 = vpop.f32.mrf.mxu3  ;;  %v3169_v0 = vpop.permute.xlu2 %1625 }
 0x247   :  { %v1709_v8 = vmul.f32 %v1606_v27, %v1453_v35 }
 0x248   :  { %v1791_v11 = vadd.f32 %v1790_v3, %v1710_v63  ;;  %v1117_v36 = vpop.f32.mrf.mxu2 }
 0x249   :  { %v1384_v34 = vpop.f32.mrf.mxu1  ;;  %v1754_v22 = vadd.f32 %v1753_v46, %v1709_v8  ;;  %v1118_v9 = vadd.f32 %v1117_v36, %v2992_v56 }
 0x24a   :  { %v1385_v57 = vadd.f32 %v1384_v34, %v1296_v7  ;;  %v3173_v34 = vpop.permute.xlu0 %1630 }
 0x24b   :  { %v1207_v39 = vadd.f32 %v1206_v15, %v1118_v9  ;;  %v1298_v12 = vpop.f32.mrf.mxu0 }
 0x24c   :  { %v1456_v16 = vmax.f32 %v1385_v57, 0.0  ;;  %v1299_v17 = vadd.f32 %v1298_v12, %v2996_v60 }
 0x24d   :  { %v1455_v2 = vmax.f32 %v1207_v39, 0.0 }
 0x24e   :  { %v1712_v6 = vmul.f32 %v1611_v55, %v1456_v16  ;;  %v1211_v43 = vpop.f32.mrf.mxu3 }
 0x24f   :  { %v1711_v51 = vmul.f32 %v1611_v55, %v1455_v2 }
 0x250   :  { %v1792_v33 = vadd.f32 %v1791_v11, %v1712_v6  ;;  %v1120_v32 = vpop.f32.mrf.mxu2 }
 0x251   :  { %v1387_v59 = vpop.f32.mrf.mxu1  ;;  %v1755_v30 = vadd.f32 %v1754_v22, %v1711_v51  ;;  %v1121_v52 = vadd.f32 %v1120_v32, %v2996_v60 }
 0x252   :  { %v1388_v61 = vadd.f32 %v1387_v59, %v1299_v17 }
 0x253   :  { %v1210_v56 = vadd.f32 %v1209_v53, %v1121_v52  ;;  %v1300_v3 = vpop.f32.mrf.mxu0 }
 0x254   :  { %v1458_v44 = vmax.f32 %v1388_v61, 0.0 }
 0x255   :  { %v1457_v1 = vmax.f32 %v1210_v56, 0.0 }
 0x256   :  { %v1714_v38 = vmul.f32 %v1616_v49, %v1458_v44  ;;  %v1214_v10 = vpop.f32.mrf.mxu3 }
 0x257   :  { %v1713_v24 = vmul.f32 %v1616_v49, %v1457_v1 }
 0x258   :  { %v3162_v41 = vadd.f32 %v1792_v33, %v1714_v38  ;;  %v1122_v26 = vpop.f32.mrf.mxu2 }
 0x259   :  { %v1389_v47 = vpop.f32.mrf.mxu1  ;;  %v1756_v20 = vadd.f32 %v1755_v30, %v1713_v24  ;;  %v1123_v31 = vadd.f32 %v1122_v26, %v2994_v45  ;;  %v3184_v26 = vpop.permute.xlu2 %1640 }
 0x25b   :  { %v1212_v62 = vadd.f32 %v1211_v43, %v1123_v31  ;;  %v1303_v29 = vpop.f32.mrf.mxu0 }
 0x25d   :  { %v1459_v37 = vmax.f32 %v1212_v62, 0.0 }
 0x25e   :  { %v1216_v15 = vpop.f32.mrf.mxu3 }
 0x25f   :  { %v1715_v60 = vmul.f32 %v3165_v48, %v1459_v37 }
 0x260   :  { %v1125_v42 = vpop.f32.mrf.mxu2 }
 0x261   :  { %v1757_v18 = vadd.f32 %v1756_v20, %v1715_v60  ;;  %v1126_v46 = vadd.f32 %v1125_v42, %v3004_v28  ;;  %v1392_v21 = vpop.f32.mrf.mxu1 }
 0x263   :  { %v1215_v13 = vadd.f32 %v1214_v10, %v1126_v46  ;;  %v1305_v57 = vpop.f32.mrf.mxu0  ;;  %v3182_v10 = vpop.permute.xlu1 %1635 }
 0x265   :  { %v1461_v25 = vmax.f32 %v1215_v13, 0.0 }
 0x266   :  { %v1219_v63 = vpop.f32.mrf.mxu3 }
 0x267   :  { %v1717_v27 = vmul.f32 %v3169_v0, %v1461_v25 }
 0x268   :  { %v1127_v35 = vpop.f32.mrf.mxu2 }
 0x269   :  { %v1758_v11 = vadd.f32 %v1757_v18, %v1717_v27  ;;  %v1128_v8 = vadd.f32 %v1127_v35, %v3014_v5  ;;  %v1394_v7 = vpop.f32.mrf.mxu1  ;;  %v1304_v27 = vadd.f32 %v1303_v29, %v3004_v28 }
 0x26b   :  { %v1217_v53 = vadd.f32 %v1216_v15, %v1128_v8  ;;  %v1308_v2 = vpop.f32.mrf.mxu0  ;;  %v1301_v15 = vadd.f32 %v1300_v3, %v2994_v45 }
 0x26d   :  { %v1463_v36 = vmax.f32 %v1217_v53, 0.0  ;;  %v1390_v25 = vadd.f32 %v1389_v47, %v1301_v15  ;;  %v3194_v53 = vpop.permute.xlu0 %1645  ;;  %v3199_v47 = vpop.permute.xlu1 %1650 }
 0x26e   :  { %v1221_v9 = vpop.f32.mrf.mxu3 }
 0x26f   :  { %v1719_v22 = vmul.f32 %v3173_v34, %v1463_v36  ;;  %v1393_v36 = vadd.f32 %v1392_v21, %v1304_v27  ;;  %v1460_v28 = vmax.f32 %v1390_v25, 0.0 }
 0x270   :  { %v1130_v16 = vpop.f32.mrf.mxu2 }
 0x271   :  { %v1759_v39 = vadd.f32 %v1758_v11, %v1719_v22  ;;  %v1397_v55 = vpop.f32.mrf.mxu1  ;;  %v1131_v49 = vadd.f32 %v1130_v16, %v3006_v4  ;;  %v1306_v22 = vadd.f32 %v1305_v57, %v3014_v5  ;;  %v1462_v5 = vmax.f32 %v1393_v36, 0.0 }
 0x273   :  { %v1310_v43 = vpop.f32.mrf.mxu0  ;;  %v1220_v20 = vadd.f32 %v1219_v63, %v1131_v49  ;;  %v1395_v29 = vadd.f32 %v1394_v7, %v1306_v22  ;;  %v1716_v7 = vmul.f32 %v3165_v48, %v1460_v28 }
 0x275   :  { %v1465_v18 = vmax.f32 %v1220_v20, 0.0 }
 0x276   :  { %v1224_v12 = vpop.f32.mrf.mxu3 }
 0x277   :  { %v1721_v45 = vmul.f32 %v3182_v10, %v1465_v18 }
 0x278   :  { %v1132_v6 = vpop.f32.mrf.mxu2 }
 0x279   :  { %v1399_v33 = vpop.f32.mrf.mxu1  ;;  %v1133_v24 = vadd.f32 %v1132_v6, %v3016_v14  ;;  %v1309_v6 = vadd.f32 %v1308_v2, %v3006_v4  ;;  %v1760_v49 = vadd.f32 %v1759_v39, %v1721_v45  ;;  %v1718_v39 = vmul.f32 %v3169_v0, %v1462_v5 }
 0x27b   :  { %v1313_v52 = vpop.f32.mrf.mxu0  ;;  %v1222_v62 = vadd.f32 %v1221_v9, %v1133_v24  ;;  %v1398_v57 = vadd.f32 %v1397_v55, %v1309_v6 }
 0x27c   :  { %v1314_v2 = vadd.f32 %v1313_v52, %v3026_v50  ;;  %v1661_v52 = vpop.permute.xlu0 %1660 }
 0x27d   :  { %v1467_v11 = vmax.f32 %v1222_v62, 0.0 }
 0x27e   :  { %v1226_v17 = vpop.f32.mrf.mxu3 }
 0x280   :  { %v1135_v51 = vpop.f32.mrf.mxu2 }
 0x281   :  { %v3176_v59 = vpop.f32.mrf.mxu1  ;;  %v1136_v31 = vadd.f32 %v1135_v51, %v3026_v50  ;;  %v3202_v51 = vpop.permute.xlu2 %1655 }
 0x282   :  { %v1403_v18 = vadd.f32 %v3176_v59, %v1314_v2 }
 0x283   :  { %v1315_v38 = vpop.f32.mrf.mxu0  ;;  %v1225_v46 = vadd.f32 %v1224_v12, %v1136_v31  ;;  %v1464_v31 = vmax.f32 %v1395_v29, 0.0 }
 0x284   :  { %v1470_v22 = vmax.f32 %v1403_v18, 0.0 }
 0x285   :  { %v1469_v3 = vmax.f32 %v1225_v46, 0.0  ;;  %v1720_v25 = vmul.f32 %v3173_v34, %v1464_v31 }
 0x286   :  { %v1229_v30 = vpop.f32.mrf.mxu3 }
 0x288   :  { %v1137_v32 = vpop.f32.mrf.mxu2 }
 0x289   :  { %v3178_v44 = vpop.f32.mrf.mxu1  ;;  %v1138_v37 = vadd.f32 %v1137_v32, %v3024_v23  ;;  %v1671_v45 = vpop.permute.xlu2 %1670 }
 0x28b   :  { %v1227_v63 = vadd.f32 %v1226_v17, %v1138_v37  ;;  %v1318_v9 = vpop.f32.mrf.mxu0  ;;  %v1723_v17 = vmul.f32 %v3184_v26, %v1467_v11 }
 0x28d   :  { %v1471_v21 = vmax.f32 %v1227_v63, 0.0  ;;  %v1761_v15 = vadd.f32 %v1760_v49, %v1723_v17  ;;  %v1319_v63 = vadd.f32 %v1318_v9, %v3034_v40 }
 0x28e   :  { %v1231_v56 = vpop.f32.mrf.mxu3 }
 0x290   :  { %v1140_v61 = vpop.f32.mrf.mxu2 }
 0x291   :  { %v3188_v60 = vpop.f32.mrf.mxu1  ;;  %v1141_v13 = vadd.f32 %v1140_v61, %v3034_v40  ;;  %v1311_v61 = vadd.f32 %v1310_v43, %v3016_v14  ;;  %v1466_v43 = vmax.f32 %v1398_v57, 0.0 }
 0x293   :  { %v1230_v16 = vadd.f32 %v1229_v30, %v1141_v13  ;;  %v1725_v30 = vmul.f32 %v3194_v53, %v1469_v3  ;;  %v1400_v4 = vadd.f32 %v1399_v33, %v1311_v61  ;;  %v1794_v13 = vadd.f32 %v3162_v41, %v1716_v7  ;;  %v1320_v11 = vpop.f32.mrf.mxu0 }
 0x294   :  { %v1722_v36 = vmul.f32 %v3182_v10, %v1466_v43  ;;  %v1408_v3 = vadd.f32 %v3188_v60, %v1319_v63  ;;  %v1321_v34 = vadd.f32 %v1320_v11, %v3040_v54 }
 0x295   :  { %v1762_v48 = vadd.f32 %v1761_v15, %v1725_v30  ;;  %v1468_v27 = vmax.f32 %v1400_v4, 0.0 }
 0x296   :  { %v1234_v42 = vpop.f32.mrf.mxu3  ;;  %v1474_v5 = vmax.f32 %v1408_v3, 0.0 }
 0x298   :  { %v1142_v1 = vpop.f32.mrf.mxu2 }
 0x299   :  { %v1143_v8 = vadd.f32 %v1142_v1, %v3040_v54  ;;  %v1473_v1 = vmax.f32 %v1230_v16, 0.0  ;;  %v1409_v24 = vpop.f32.mrf.mxu1 }
 0x29a   :  { %v1410_v9 = vadd.f32 %v1409_v24, %v1321_v34 }
 0x29b   :  { %v1232_v32 = vadd.f32 %v1231_v56, %v1143_v8  ;;  %v1727_v56 = vmul.f32 %v3199_v47, %v1471_v21  ;;  %v1729_v33 = vmul.f32 %v3202_v51, %v1473_v1  ;;  %v1730_v1 = vmul.f32 %v3202_v51, %v1474_v5 }
 0x29c   :  { %v1476_v49 = vmax.f32 %v1410_v9, 0.0 }
 0x29d   :  { %v1475_v55 = vmax.f32 %v1232_v32, 0.0  ;;  %v1763_v0 = vadd.f32 %v1762_v48, %v1727_v56  ;;  %v1726_v32 = vmul.f32 %v3194_v53, %v1470_v22 }
 0x29e   :  { %v1236_v37 = vpop.f32.mrf.mxu3  ;;  %v1732_v31 = vmul.f32 %v1661_v52, %v1476_v49 }
 0x29f   :  { %v1731_v59 = vmul.f32 %v1661_v52, %v1475_v55  ;;  %v1764_v41 = vadd.f32 %v1763_v0, %v1729_v33 }
 0x2a0   :  { %v1145_v35 = vpop.f32.mrf.mxu2 }
 0x2a1   :  { %v1146_v12 = vadd.f32 %v1145_v35, %v3037_v58  ;;  %v1412_v40 = vpop.f32.mrf.mxu1  ;;  %v1765_v6 = vadd.f32 %v1764_v41, %v1731_v59 }
 0x2a3   :  { %v1235_v20 = vadd.f32 %v1234_v42, %v1146_v12  ;;  %v1316_v42 = vadd.f32 %v1315_v38, %v3024_v23  ;;  %v1666_v23 = vpop.permute.xlu1 %1665  ;;  %v1795_v38 = vadd.f32 %v1794_v13, %v1718_v39  ;;  %v1821_v13 = vlaneseq }
 0x2a5   :  { %v1477_v46 = vmax.f32 %v1235_v20, 0.0  ;;  %v1405_v35 = vadd.f32 %v3178_v44, %v1316_v42  ;;  %v1796_v12 = vadd.f32 %v1795_v38, %v1720_v25  ;;  %v1724_v44 = vmul.f32 %v3184_v26, %v1468_v27 }
 0x2a6   :  { %v1812_v25 = vstv %s3241_s7  ;;  %vm1823_vm3 = vcmp.lt.s32.totalorder %v1821_v13, 256 }
 0x2a7   :  { %v1733_v16 = vmul.f32 %v1666_v23, %v1477_v46  ;;  %v1472_v28 = vmax.f32 %v1405_v35, 0.0  ;;  %v1797_v10 = vadd.f32 %v1796_v12, %v1722_v36 }
 0x2a8   :  { %v1147_v62 = vpop.f32.mrf.mxu2 }
 0x2a9   :  { %v1148_v14 = vadd.f32 %v1147_v62, %v3050_v19  ;;  %v1766_v60 = vadd.f32 %v1765_v6, %v1733_v16  ;;  %v1798_v61 = vadd.f32 %v1797_v10, %v1724_v44  ;;  %v1728_v54 = vmul.f32 %v3199_v47, %v1472_v28  ;;  %v1414_v2 = vpop.f32.mrf.mxu1 }
 0x2ab   :  { %v1237_v50 = vadd.f32 %v1236_v37, %v1148_v14  ;;  %v1799_v26 = vadd.f32 %v1798_v61, %v1726_v32 }
 0x2ad   :  { %v1479_v8 = vmax.f32 %v1237_v50, 0.0  ;;  %v1800_v7 = vadd.f32 %v1799_v26, %v1728_v54 }
 0x2af   :  { %v1735_v17 = vmul.f32 %v1671_v45, %v1479_v8  ;;  %v1801_v53 = vadd.f32 %v1800_v7, %v1730_v1 }
 0x2b0   :  { %v1323_v29 = vpop.f32.mrf.mxu2 }
 0x2b1   :  { %v1324_v21 = vadd.f32 %v1323_v29, %v3037_v58  ;;  %v1767_v30 = vadd.f32 %v1766_v60, %v1735_v17  ;;  %v1802_v15 = vadd.f32 %v1801_v53, %v1732_v31 }
 0x2b3   :  { %v1413_v57 = vadd.f32 %v1412_v40, %v1324_v21  ;;  %v1768_v4 = vrot.slane %v1767_v30, 4 }
 0x2b5   :  { %v1478_v20 = vmax.f32 %v1413_v57, 0.0  ;;  %v1769_v56 = vadd.f32 %v1768_v4, %v1767_v30 }
 0x2b7   :  { %v1734_v62 = vmul.f32 %v1666_v23, %v1478_v20  ;;  %v1770_v39 = vrot.slane %v1769_v56, 2 }
 0x2b8   :  { %v1325_v24 = vpop.f32.mrf.mxu2 }
 0x2b9   :  { %v1326_v58 = vadd.f32 %v1325_v24, %v3050_v19  ;;  %v1803_v47 = vadd.f32 %v1802_v15, %v1734_v62  ;;  %v1771_v51 = vadd.f32 %v1770_v39, %v1769_v56 }
 0x2bb   :  { %v1415_v37 = vadd.f32 %v1414_v2, %v1326_v58  ;;  %v1772_v33 = vrot.slane %v1771_v51, 1 }
 0x2bd   :  { %v1480_v55 = vmax.f32 %v1415_v37, 0.0  ;;  %v1773_v19 = vadd.f32 %v1772_v33, %v1771_v51 }
 0x2bf   :  { %v1736_v14 = vmul.f32 %v1671_v45, %v1480_v55  ;;  %v1813_v35 = vadd.f32 %v1812_v25, %v1773_v19 }
 0x2c1   :  { %v1804_v43 = vadd.f32 %v1803_v47, %v1736_v14 }
 0x2c3   :  { %v1805_v18 = vrot.slane %v1804_v43, 4 }
 0x2c5   :  { %v1806_v42 = vadd.f32 %v1805_v18, %v1804_v43 }
 0x2c7   :  { %v1807_v48 = vrot.slane %v1806_v42, 2 }
 0x2c9   :  { %v1808_v46 = vadd.f32 %v1807_v48, %v1806_v42 }
 0x2cb   :  { %v1809_v50 = vrot.slane %v1808_v46, 1 }
 0x2cd   :  { %v1810_v52 = vadd.f32 %v1809_v50, %v1808_v46 }
 0x2cf   :  { %v1814_v27 = vadd.f32 %v1812_v25, %v1810_v52 }
 0x2d1   :  { %v1817_v11 = vrot.slane %v1814_v27, 7 }
 0x2d3   :  { %v1819_v0 = vsel %vm1818_vm2, %v1813_v35, %v1817_v11 }
 0x2d4   :  { %1825 = vst.msk [vmem:[#allocation3] sm:$0x3] %vm1823_vm3, %v1819_v0 }
 0x2d5   :  { %1836 = dma.vmem_to_hbm [thread:$0]  %s1832_s2, 32, %s1834_s24, [#allocation4]  }
 0x2d6   :  { %2153 = dma.done.wait [#allocation4], 32  }
 0x2d7   :  { %2154 = vsyncadd [#allocation4], 4294967264 }
 0x2d8   :  { %1841 = vsyncpa [#allocation4], 1 }

</bundles_post_ra>
